<compile_context>
chip_gen: v5e
topology: v5e:2x2
jax: 0.10.0
libtpu: 0.0.40
codegen_flags: <defaults>
</compile_context>

<pallas_src>
import functools

import jax
import jax.numpy as jnp
from jax.experimental import pallas as pl
from jax.experimental.pallas import tpu as pltpu


# ----------------------------------------------------------------------------
# Helpers
# ----------------------------------------------------------------------------
def _round_up(v, m):
    return ((v + m - 1) // m) * m


def _vmem_cap_bytes():
    """~85% of physical VMEM if discoverable, else a 64 MiB safe default."""
    cap = None
    try:
        info = pltpu.get_tpu_info()
        for name in ("vmem_capacity_bytes", "vmem_size_bytes", "vmem_bytes"):
            v = getattr(info, name, None)
            if v:
                cap = int(v)
                break
    except Exception:
        cap = None
    if cap is None:
        return 64 << 20
    return int(cap * 0.85)


def _vmem_estimate(n, tm, tk, dp, bp):
    """Census of VMEM consumers (double-buffered streamed blocks + scratch)."""
    return int(
        2 * tm * tk * 2          # adj tile (bf16), double buffered
        + 2 * tk * dp * 4        # x tile (f32)
        + 2 * dp * dp * 4        # layer W
        + 2 * 8 * dp * 4         # fused (bias, gamma, beta, mask) block
        + 2 * dp * dp * 4        # final linear W
        + 2 * 8 * dp * 4         # final linear b
        + 2 * bp * dp * 4        # encoder logits
        + 2 * bp * dp * 4        # output block
        + 2 * n * dp * 4         # h ping-pong scratch (f32)
        + n * dp * 2             # cached per-layer support (bf16)
        + tm * dp * 4            # adj-matmul accumulator
        + bp * dp * 4            # gathered rows
        + (4 << 20))             # Mosaic headroom


def _pick_tile(n, dp, bp, cap):
    for t in (1024, 512, 256, 128):
        if n % t == 0 and _vmem_estimate(n, t, t, dp, bp) <= cap:
            return t
    return 128


# ----------------------------------------------------------------------------
# Fused kernel
# ----------------------------------------------------------------------------
def _fused_type4_kernel(
    # ---- scalar prefetch (SMEM) ----
    idx_ref,    # (BP,)  int32  gather indices (padded with 0)
    nz_ref,     # (T,)   int32  per grid-step: adj tile has any nonzero
    sl_ref,     # (T,)   int32  adj fetch schedule (layer index)
    si_ref,     # (T,)   int32  adj fetch schedule (row-tile index)
    sk_ref,     # (T,)   int32  adj fetch schedule (k-tile index)
    # ---- streamed inputs ----
    adj_ref,    # (1, TM, TK) bf16   block of adj (per fetch schedule)
    x_ref,      # (TK, DP)    f32    padded node features (layer-0 k-tile)
    w_ref,      # (1, DP, DP) f32    W of layer l (zero padded)
    par_ref,    # (1, 8, DP)  f32    rows: bias, gamma, beta, mask, 0...
    lw_ref,     # (DP, DP)    f32    final linear W (zero padded)
    lb_ref,     # (1, DP)     f32
    enc_ref,    # (BP, DP)    f32    padded encoder logits
    # ---- output ----
    out_ref,    # (BP, DP)    f32
    # ---- scratch ----
    h_buf,      # VMEM (2*N, DP) f32   ping-pong node features
    sup_buf,    # VMEM (N, DP)   bf16  cached support = h_in @ W_l
    acc_ref,    # VMEM (TM, DP)  f32   adj-matmul accumulator
    sel_buf,    # VMEM (BP, DP)  f32   gathered rows
    *, n, tm, tk, dp, num_layers, bp, fan_out, lmbd,
):
    l = pl.program_id(0)
    i = pl.program_id(1)
    k = pl.program_id(2)
    ni = pl.num_programs(1)
    nk = pl.num_programs(2)

    koff = pl.multiple_of(k * tk, tk)
    ioff = pl.multiple_of(i * tm, tm)
    in_base = jax.lax.rem(l, 2) * n          # layer l reads half l%2 (layers >= 1)
    out_base = jax.lax.rem(l + 1, 2) * n     # and writes half (l+1)%2

    # --- cache support[k-tile] = h_in[k-tile] @ W_l once per layer (i == 0) ---
    @pl.when((i == 0) & (l == 0))
    def _():
        sup = jnp.dot(x_ref[...], w_ref[0], preferred_element_type=jnp.float32)
        sup_buf[pl.ds(koff, tk), :] = sup.astype(jnp.bfloat16)

    @pl.when((i == 0) & (l > 0))
    def _():
        h_in = h_buf[pl.ds(pl.multiple_of(in_base + koff, tk), tk), :]
        sup = jnp.dot(h_in, w_ref[0], preferred_element_type=jnp.float32)
        sup_buf[pl.ds(koff, tk), :] = sup.astype(jnp.bfloat16)

    @pl.when(k == 0)
    def _():
        acc_ref[...] = jnp.zeros_like(acc_ref)

    # --- acc += adj[l, i-tile, k-tile] @ support[k-tile]  (skip all-zero tiles,
    #     whose DMA was already elided by the fetch schedule) ---
    t = (l * ni + i) * nk + k
    @pl.when(nz_ref[t] > 0)
    def _():
        acc_ref[...] += jnp.dot(adj_ref[0], sup_buf[pl.ds(koff, tk), :],
                                preferred_element_type=jnp.float32)

    # --- k == last: bias + masked LayerNorm (+ leaky_relu on loop layers) ---
    @pl.when(k == nk - 1)
    def _():
        p = par_ref[0]                                   # (8, dp)
        bias = p[0:1, :]
        gamma = p[1:2, :]
        beta = p[2:3, :]
        mask = p[3:4, :]                                 # 1. on real lanes, 0. on pad
        # padded lanes of acc and bias are zero (W columns / bias pads are zero)
        h = acc_ref[...] + bias
        inv_d = 1.0 / jnp.sum(mask, axis=-1, keepdims=True)   # 1 / true feature dim
        mu = jnp.sum(h, axis=-1, keepdims=True) * inv_d
        diff = (h - mu) * mask                           # re-zero pad lanes (mu leaks)
        var = jnp.sum(diff * diff, axis=-1, keepdims=True) * inv_d
        y = diff * jax.lax.rsqrt(var + 1e-5)
        y = y * gamma + beta                             # pad(gamma)=pad(beta)=0
        # first layer: LN only; loop layers: F.leaky_relu (slope 0.01)
        y = jnp.where((l > 0) & (y < 0.0), 0.01 * y, y)
        # TODO(synk): dropout is inference-mode identity (training=False).
        h_buf[pl.ds(pl.multiple_of(out_base + ioff, tm), tm), :] = y

    # --- very last grid step: gather [idx] rows, final linear + log_softmax,
    #     blend with log_softmax(encoder logits) ---
    @pl.when((l == num_layers - 1) & (i == ni - 1) & (k == nk - 1))
    def _():
        base = (num_layers % 2) * n                      # static python int
        # TODO(synk): for large batches a DMA gather would beat per-row copies.
        for b in range(bp):
            sel_buf[pl.ds(b, 1), :] = h_buf[pl.ds(base + idx_ref[b], 1), :]
        z = jnp.dot(sel_buf[...], lw_ref[...], preferred_element_type=jnp.float32)
        z = z + lb_ref[...]
        cls = jax.lax.broadcasted_iota(jnp.int32, (bp, dp), 1) < fan_out
        neg = jnp.float32(-1e30)

        def masked_log_softmax(v):
            vm = jnp.where(cls, v, neg)
            mx = jnp.max(vm, axis=-1, keepdims=True)
            e = jnp.where(cls, jnp.exp(vm - mx), 0.0)
            return vm - mx - jnp.log(jnp.sum(e, axis=-1, keepdims=True))

        pred = (masked_log_softmax(z) * lmbd
                + masked_log_softmax(enc_ref[...]) * (1.0 - lmbd))
        out_ref[...] = jnp.where(cls, pred, 0.0)


# ----------------------------------------------------------------------------
# Wrapper: pad / stack params, build the sparse-tile schedule, one pallas_call
# ----------------------------------------------------------------------------
def type4_forward(params, x, adj_matrices, encoder_preds, idx, lmbd, tile=None):
    n0, fan_in = x.shape
    num_layers = len(adj_matrices)
    hidden = [params["w0"].shape[1]] + [w.shape[1] for w in params["loop_w"]]
    fan_out = params["lin_w"].shape[1]
    batch = idx.shape[0]

    dp = _round_up(max([fan_in, fan_out] + hidden), 128)   # lane-dense feature dim
    bp = _round_up(max(batch, 8), 8)                       # sublane-dense batch
    n = _round_up(n0, 128)                                 # 128-aligned node count

    cap = _vmem_cap_bytes()
    tm = tk = tile if tile is not None else _pick_tile(n, dp, bp, cap)
    assert n % tm == 0 and n % tk == 0
    ni, nk = n // tm, n // tk

    def pad_mat(w):
        return jnp.pad(w.astype(jnp.float32),
                       ((0, dp - w.shape[0]), (0, dp - w.shape[1])))

    def pad_vec(v):
        return jnp.pad(v.astype(jnp.float32), (0, dp - v.shape[0])).reshape(1, dp)

    # Per-layer W stacked so one grid axis walks the layers.
    w_all = jnp.stack([pad_mat(params["w0"])] + [pad_mat(w) for w in params["loop_w"]])

    # Fused per-layer (bias, gamma, beta, mask) -> single (L, 8, dp) operand.
    def layer_pack(b, g, bt, hdim):
        rows = [pad_vec(b), pad_vec(g), pad_vec(bt),
                pad_vec(jnp.ones((hdim,), jnp.float32))]
        return jnp.concatenate(rows + [jnp.zeros((4, dp), jnp.float32)], axis=0)

    par_all = jnp.stack(
        [layer_pack(params["b0"], params["ln0_g"], params["ln0_b"], hidden[0])]
        + [layer_pack(params["loop_b"][i], params["loop_ln_g"][i],
                      params["loop_ln_b"][i], hidden[i + 1])
           for i in range(num_layers - 1)])

    # Adjacency streamed in bf16 (dominant HBM traffic); padded rows/cols are zero.
    adj_all = jnp.stack(
        [jnp.pad(a.astype(jnp.bfloat16), ((0, n - n0), (0, n - n0)))
         for a in adj_matrices])                               # (L, N, N)
    x_pad = jnp.pad(x.astype(jnp.float32), ((0, n - n0), (0, dp - fan_in)))
    lin_w = pad_mat(params["lin_w"])
    lin_b = pad_vec(params["lin_b"])
    enc_pad = jnp.pad(encoder_preds.astype(jnp.float32),
                      ((0, bp - batch), (0, dp - fan_out)))
    idx_pad = jnp.pad(idx.astype(jnp.int32), (0, bp - batch))

    # --- block-sparse tile mask + adj fetch schedule (scalar prefetch) ---
    # NOTE: in real GNN training the adjacency is static, so this should be
    # precomputed once per graph; recomputed here to stay self-contained.
    tiles = adj_all.reshape(num_layers, ni, tm, nk, tk)
    nz = jnp.any(tiles != 0, axis=(2, 4)).reshape(-1)          # (T,) bool
    nz_i32 = nz.astype(jnp.int32)
    t_arr = jnp.arange(nz.shape[0], dtype=jnp.int32)
    # For zero tiles, fetch the same block as the previous step -> DMA elided.
    src_t = jnp.maximum(jax.lax.cummax(jnp.where(nz, t_arr, -1), axis=0), 0)
    sched_l = (src_t // (ni * nk)).astype(jnp.int32)
    sched_i = ((src_t // nk) % ni).astype(jnp.int32)
    sched_k = (src_t % nk).astype(jnp.int32)

    grid = (num_layers, ni, nk)
    kern = functools.partial(
        _fused_type4_kernel, n=n, tm=tm, tk=tk, dp=dp, num_layers=num_layers,
        bp=bp, fan_out=fan_out, lmbd=float(lmbd))

    vmem_bytes = min(max(_vmem_estimate(n, tm, tk, dp, bp), 32 << 20), cap)

    def adj_map(l, i, k, idx_r, nz_r, sl_r, si_r, sk_r):
        t = (l * ni + i) * nk + k
        return (sl_r[t], si_r[t], sk_r[t])

    out = pl.pallas_call(
        kern,
        out_shape=jax.ShapeDtypeStruct((bp, dp), jnp.float32),
        grid_spec=pltpu.PrefetchScalarGridSpec(
            num_scalar_prefetch=5,
            grid=grid,
            in_specs=[
                # adjacency: schedule-driven fetch (zero tiles reuse previous block)
                pl.BlockSpec((1, tm, tk), adj_map),
                # x: only consumed during (l==0, i==0); index frozen afterwards
                pl.BlockSpec((tk, dp),
                             lambda l, i, k, *_:
                             (jnp.where((l == 0) & (i == 0), k, 0), 0)),
                pl.BlockSpec((1, dp, dp), lambda l, i, k, *_: (l, 0, 0)),
                pl.BlockSpec((1, 8, dp), lambda l, i, k, *_: (l, 0, 0)),
                pl.BlockSpec((dp, dp), lambda l, i, k, *_: (0, 0)),
                pl.BlockSpec((1, dp), lambda l, i, k, *_: (0, 0)),
                pl.BlockSpec((bp, dp), lambda l, i, k, *_: (0, 0)),
            ],
            out_specs=pl.BlockSpec((bp, dp), lambda l, i, k, *_: (0, 0)),
            scratch_shapes=[
                pltpu.VMEM((2 * n, dp), jnp.float32),    # h ping-pong
                pltpu.VMEM((n, dp), jnp.bfloat16),       # cached support
                pltpu.VMEM((tm, dp), jnp.float32),       # adj-matmul accumulator
                pltpu.VMEM((bp, dp), jnp.float32),       # gathered rows
            ],
        ),
        compiler_params=pltpu.CompilerParams(
            # 'arbitrary' everywhere: h / support are carried in VMEM scratch
            # across grid iterations, so axes cannot be split across cores.
            dimension_semantics=("arbitrary", "arbitrary", "arbitrary"),
            vmem_limit_bytes=vmem_bytes),
    )(idx_pad, nz_i32, sched_l, sched_i, sched_k,
      adj_all, x_pad, w_all, par_all, lin_w, lin_b, enc_pad)

    return out[:batch, :fan_out]


# ----------------------------------------------------------------------------
# Parameter init (matches Type12 structure)
# ----------------------------------------------------------------------------
def init_params(key, fan_in, fan_mid, fan_out, num_layers):
    hidden_sizes = [fan_mid // (2 ** i) for i in range(num_layers)]
    keys = jax.random.split(key, 3 + 2 * (num_layers - 1))
    ki = iter(keys)

    def w_init(k, shape):
        return (jax.random.normal(k, shape, dtype=jnp.float32)
                * (1.0 / jnp.sqrt(shape[0])))

    params = {
        "w0": w_init(next(ki), (fan_in, hidden_sizes[0])),
        "b0": jnp.zeros((hidden_sizes[0],), jnp.float32),
        "ln0_g": jnp.ones((hidden_sizes[0],), jnp.float32),
        "ln0_b": jnp.zeros((hidden_sizes[0],), jnp.float32),
        "loop_w": [], "loop_b": [], "loop_ln_g": [], "loop_ln_b": [],
    }
    for i in range(num_layers - 1):
        din, dout = hidden_sizes[i], hidden_sizes[i] // 2
        params["loop_w"].append(w_init(next(ki), (din, dout)))
        params["loop_b"].append(jnp.zeros((dout,), jnp.float32))
        params["loop_ln_g"].append(jnp.ones((dout,), jnp.float32))
        params["loop_ln_b"].append(jnp.zeros((dout,), jnp.float32))
    params["lin_w"] = w_init(next(ki), (hidden_sizes[-1], fan_out))
    params["lin_b"] = w_init(next(ki), (fan_out,)).reshape(-1)
    return params


# ----------------------------------------------------------------------------
# Pure-JAX reference (f32) for a sanity check
# ----------------------------------------------------------------------------
def _ln_ref(h, g, b):
    mu = h.mean(-1, keepdims=True)
    var = ((h - mu) ** 2).mean(-1, keepdims=True)
    return (h - mu) / jnp.sqrt(var + 1e-5) * g + b


def _reference(params, x, adjs, enc, idx, lmbd):
    h = adjs[0] @ (x @ params["w0"]) + params["b0"]
    h = _ln_ref(h, params["ln0_g"], params["ln0_b"])
    for i in range(len(params["loop_w"])):
        h = adjs[i + 1] @ (h @ params["loop_w"][i]) + params["loop_b"][i]
        h = _ln_ref(h, params["loop_ln_g"][i], params["loop_ln_b"][i])
        h = jnp.where(h >= 0, h, 0.01 * h)
    z = h @ params["lin_w"] + params["lin_b"]
    gcn = jax.nn.log_softmax(z, axis=1)[idx]
    return gcn * lmbd + jax.nn.log_softmax(enc, axis=1) * (1.0 - lmbd)


# ----------------------------------------------------------------------------
# Main
# ----------------------------------------------------------------------------
def _make_adj(key, n, block_diag=None):
    a = (jax.random.uniform(key, (n, n)) < 0.05).astype(jnp.float32)
    a = a + a.T + jnp.eye(n, dtype=jnp.float32)
    if block_diag is not None:
        nb = n // block_diag
        bd = jnp.kron(jnp.eye(nb, dtype=jnp.float32),
                      jnp.ones((block_diag, block_diag), jnp.float32))
        a = a * bd
    return a / jnp.sum(a, axis=1, keepdims=True)


if __name__ == "__main__":
    FAN_IN = 32
    FAN_MID = 32
    FAN_OUT = 8
    NUM_LAYERS = 2   # len(adj_list)
    LMBD = 0.6
    BATCH = 4        # len(idx) == encoder batch

    key = jax.random.PRNGKey(0)
    k_x, k_adj, k_enc, k_idx, k_par, k_x2, k_adj2, k_idx2 = jax.random.split(key, 8)
    params = init_params(k_par, FAN_IN, FAN_MID, FAN_OUT, NUM_LAYERS)
    encoder_preds = jax.random.normal(k_enc, (BATCH, FAN_OUT), dtype=jnp.float32)

    # ---- Test 1: small graph, single tile ----
    N = 128
    x = jax.random.normal(k_x, (N, FAN_IN), dtype=jnp.float32)
    adj_keys = jax.random.split(k_adj, NUM_LAYERS)
    adj_matrices = [_make_adj(ka, N) for ka in adj_keys]
    idx = jax.random.randint(k_idx, (BATCH,), 0, N)

    pred = type4_forward(params, x, adj_matrices, encoder_preds, idx, LMBD)
    jax.block_until_ready(pred)
    assert pred.shape == (BATCH, FAN_OUT)
    assert bool(jnp.all(jnp.isfinite(pred)))
    ref = _reference(params, x, adj_matrices, encoder_preds, idx, LMBD)
    err = float(jnp.max(jnp.abs(pred - ref)))
    assert err < 0.15, f"mismatch vs f32 reference (test 1): {err}"

    # ---- Test 2: multi-tile grid (forced 128 tiles) with a block-diagonal
    #      second adjacency to exercise the k-reduction, multiple row tiles
    #      and the zero-tile DMA-skip path ----
    N2 = 256
    x2 = jax.random.normal(k_x2, (N2, FAN_IN), dtype=jnp.float32)
    adj_keys2 = jax.random.split(k_adj2, NUM_LAYERS)
    adj_matrices2 = [_make_adj(adj_keys2[0], N2),
                     _make_adj(adj_keys2[1], N2, block_diag=128)]
    idx2 = jax.random.randint(k_idx2, (BATCH,), 0, N2)

    pred2 = type4_forward(params, x2, adj_matrices2, encoder_preds, idx2, LMBD,
                          tile=128)
    jax.block_until_ready(pred2)
    assert pred2.shape == (BATCH, FAN_OUT)
    assert bool(jnp.all(jnp.isfinite(pred2)))
    ref2 = _reference(params, x2, adj_matrices2, encoder_preds, idx2, LMBD)
    err2 = float(jnp.max(jnp.abs(pred2 - ref2)))
    assert err2 < 0.2, f"mismatch vs f32 reference (test 2): {err2}"

    print("KERNEL_OK")
</pallas_src>

<mosaic_0001>
module attributes {stable_mosaic.version = 11 : i64} {
  func.func @_fused_type4_kernel(%arg0: i32, %arg1: i32, %arg2: i32, %arg3: memref<8xi32, #tpu.memory_space<smem>>, %arg4: memref<2xi32, #tpu.memory_space<smem>>, %arg5: memref<2xi32, #tpu.memory_space<smem>>, %arg6: memref<2xi32, #tpu.memory_space<smem>>, %arg7: memref<2xi32, #tpu.memory_space<smem>>, %arg8: memref<1x128x128xbf16, #tpu.memory_space<vmem>>, %arg9: memref<128x128xf32, #tpu.memory_space<vmem>>, %arg10: memref<1x128x128xf32, #tpu.memory_space<vmem>>, %arg11: memref<1x8x128xf32, #tpu.memory_space<vmem>>, %arg12: memref<128x128xf32, #tpu.memory_space<vmem>>, %arg13: memref<1x128xf32, #tpu.memory_space<vmem>>, %arg14: memref<8x128xf32, #tpu.memory_space<vmem>>, %arg15: memref<8x128xf32, #tpu.memory_space<vmem>>, %arg16: memref<256x128xf32, #tpu.memory_space<vmem>>, %arg17: memref<128x128xbf16, #tpu.memory_space<vmem>>, %arg18: memref<128x128xf32, #tpu.memory_space<vmem>>, %arg19: memref<8x128xf32, #tpu.memory_space<vmem>>) attributes {dimension_semantics = [#tpu.dimension_semantics<arbitrary>, #tpu.dimension_semantics<arbitrary>, #tpu.dimension_semantics<arbitrary>], iteration_bounds = array<i64: 2, 1, 1>, scalar_prefetch = 5 : i64, scratch_operands = 4 : i64, tpu.core_type = #tpu.core_type<tc>, window_params = [{transform_indices = @transform_0, window_bounds = array<i64: 1, 128, 128>}, {transform_indices = @transform_1, window_bounds = array<i64: 128, 128>}, {transform_indices = @transform_2, window_bounds = array<i64: 1, 128, 128>}, {transform_indices = @transform_3, window_bounds = array<i64: 1, 8, 128>}, {pipeline_mode = #tpu.pipeline_mode<synchronous>, transform_indices = @transform_4, window_bounds = array<i64: 128, 128>}, {pipeline_mode = #tpu.pipeline_mode<synchronous>, transform_indices = @transform_5, window_bounds = array<i64: 1, 128>}, {pipeline_mode = #tpu.pipeline_mode<synchronous>, transform_indices = @transform_6, window_bounds = array<i64: 8, 128>}, {pipeline_mode = #tpu.pipeline_mode<synchronous>, transform_indices = @transform_7, window_bounds = array<i64: 8, 128>}]} {
    %c128_i32 = arith.constant 128 : i32
    %0 = arith.muli %arg2, %c128_i32 : i32
    %1 = tpu.assume_multiple %0, 128 : i32
    %c128_i32_0 = arith.constant 128 : i32
    %2 = arith.muli %arg1, %c128_i32_0 : i32
    %3 = tpu.assume_multiple %2, 128 : i32
    %c2_i32 = arith.constant 2 : i32
    %4 = arith.remsi %arg0, %c2_i32 : i32
    %c128_i32_1 = arith.constant 128 : i32
    %5 = arith.muli %4, %c128_i32_1 : i32
    %c1_i32 = arith.constant 1 : i32
    %6 = arith.addi %arg0, %c1_i32 : i32
    %c2_i32_2 = arith.constant 2 : i32
    %7 = arith.remsi %6, %c2_i32_2 : i32
    %c128_i32_3 = arith.constant 128 : i32
    %8 = arith.muli %7, %c128_i32_3 : i32
    %c0_i32 = arith.constant 0 : i32
    %9 = arith.cmpi eq, %arg1, %c0_i32 : i32
    %c0_i32_4 = arith.constant 0 : i32
    %10 = arith.cmpi eq, %arg0, %c0_i32_4 : i32
    %11 = arith.andi %9, %10 : i1
    %12 = arith.extui %11 : i1 to i32
    %c0_i32_5 = arith.constant 0 : i32
    %13 = arith.cmpi ne, %12, %c0_i32_5 : i32
    scf.if %13 {
      %c0 = arith.constant 0 : index
      %c0_21 = arith.constant 0 : index
      %41 = vector.load %arg9[%c0, %c0_21] : memref<128x128xf32, #tpu.memory_space<vmem>>, vector<128x128xf32>
      %c0_22 = arith.constant 0 : index
      %c0_23 = arith.constant 0 : index
      %c0_24 = arith.constant 0 : index
      %42 = vector.load %arg10[%c0_22, %c0_23, %c0_24] : memref<1x128x128xf32, #tpu.memory_space<vmem>>, vector<1x128x128xf32>
      %43 = vector.shape_cast %42 : vector<1x128x128xf32> to vector<128x128xf32>
      %cst = arith.constant dense<0.000000e+00> : vector<128x128xf32>
      %44 = tpu.matmul %41, %43, %cst {dimension_numbers = #tpu.dot_dimension_numbers<[1], [0], [0], [1], [0, 0, 1, 1], [], []>} : vector<128x128xf32>, vector<128x128xf32>, vector<128x128xf32> -> vector<128x128xf32>
      %45 = arith.truncf %44 : vector<128x128xf32> to vector<128x128xbf16>
      %46 = arith.index_cast %1 : i32 to index
      %c0_25 = arith.constant 0 : index
      %47 = vector.load %arg17[%46, %c0_25] : memref<128x128xbf16, #tpu.memory_space<vmem>>, vector<128x128xbf16>
      tpu.vector_store %arg17[%46, %c0_25], %45 {strides = array<i32>} : memref<128x128xbf16, #tpu.memory_space<vmem>>, vector<128x128xbf16>,
    } else {
    }
    %c0_i32_6 = arith.constant 0 : i32
    %14 = arith.cmpi eq, %arg1, %c0_i32_6 : i32
    %c0_i32_7 = arith.constant 0 : i32
    %15 = arith.cmpi sgt, %arg0, %c0_i32_7 : i32
    %16 = arith.andi %14, %15 : i1
    %17 = arith.extui %16 : i1 to i32
    %c0_i32_8 = arith.constant 0 : i32
    %18 = arith.cmpi ne, %17, %c0_i32_8 : i32
    scf.if %18 {
      %41 = arith.addi %5, %1 : i32
      %42 = tpu.assume_multiple %41, 128 : i32
      %43 = arith.index_cast %42 : i32 to index
      %c0 = arith.constant 0 : index
      %44 = vector.load %arg16[%43, %c0] : memref<256x128xf32, #tpu.memory_space<vmem>>, vector<128x128xf32>
      %c0_21 = arith.constant 0 : index
      %c0_22 = arith.constant 0 : index
      %c0_23 = arith.constant 0 : index
      %45 = vector.load %arg10[%c0_21, %c0_22, %c0_23] : memref<1x128x128xf32, #tpu.memory_space<vmem>>, vector<1x128x128xf32>
      %46 = vector.shape_cast %45 : vector<1x128x128xf32> to vector<128x128xf32>
      %cst = arith.constant dense<0.000000e+00> : vector<128x128xf32>
      %47 = tpu.matmul %44, %46, %cst {dimension_numbers = #tpu.dot_dimension_numbers<[1], [0], [0], [1], [0, 0, 1, 1], [], []>} : vector<128x128xf32>, vector<128x128xf32>, vector<128x128xf32> -> vector<128x128xf32>
      %48 = arith.truncf %47 : vector<128x128xf32> to vector<128x128xbf16>
      %49 = arith.index_cast %1 : i32 to index
      %c0_24 = arith.constant 0 : index
      %50 = vector.load %arg17[%49, %c0_24] : memref<128x128xbf16, #tpu.memory_space<vmem>>, vector<128x128xbf16>
      tpu.vector_store %arg17[%49, %c0_24], %48 {strides = array<i32>} : memref<128x128xbf16, #tpu.memory_space<vmem>>, vector<128x128xbf16>,
    } else {
    }
    %c0_i32_9 = arith.constant 0 : i32
    %19 = arith.cmpi eq, %arg2, %c0_i32_9 : i32
    %20 = arith.extui %19 : i1 to i32
    %c0_i32_10 = arith.constant 0 : i32
    %21 = arith.cmpi ne, %20, %c0_i32_10 : i32
    scf.if %21 {
      %cst = arith.constant 0.000000e+00 : f32
      %41 = vector.broadcast %cst : f32 to vector<128x128xf32>
      %c0 = arith.constant 0 : index
      %c0_21 = arith.constant 0 : index
      %42 = vector.load %arg18[%c0, %c0_21] : memref<128x128xf32, #tpu.memory_space<vmem>>, vector<128x128xf32>
      tpu.vector_store %arg18[%c0, %c0_21], %41 {strides = array<i32>} : memref<128x128xf32, #tpu.memory_space<vmem>>, vector<128x128xf32>,
    } else {
    }
    %c1_i32_11 = arith.constant 1 : i32
    %22 = arith.muli %arg0, %c1_i32_11 : i32
    %23 = arith.addi %22, %arg1 : i32
    %c1_i32_12 = arith.constant 1 : i32
    %24 = arith.muli %23, %c1_i32_12 : i32
    %25 = arith.addi %24, %arg2 : i32
    %26 = arith.index_cast %25 : i32 to index
    %27 = memref.load %arg4[%26] : memref<2xi32, #tpu.memory_space<smem>>
    %c0_i32_13 = arith.constant 0 : i32
    %28 = arith.cmpi sgt, %27, %c0_i32_13 : i32
    %29 = arith.extui %28 : i1 to i32
    %c0_i32_14 = arith.constant 0 : i32
    %30 = arith.cmpi ne, %29, %c0_i32_14 : i32
    scf.if %30 {
      %c0 = arith.constant 0 : index
      %c0_21 = arith.constant 0 : index
      %41 = vector.load %arg18[%c0, %c0_21] : memref<128x128xf32, #tpu.memory_space<vmem>>, vector<128x128xf32>
      %c0_22 = arith.constant 0 : index
      %c0_23 = arith.constant 0 : index
      %c0_24 = arith.constant 0 : index
      %42 = vector.load %arg8[%c0_22, %c0_23, %c0_24] : memref<1x128x128xbf16, #tpu.memory_space<vmem>>, vector<1x128x128xbf16>
      %43 = vector.shape_cast %42 : vector<1x128x128xbf16> to vector<128x128xbf16>
      %44 = arith.index_cast %1 : i32 to index
      %c0_25 = arith.constant 0 : index
      %45 = vector.load %arg17[%44, %c0_25] : memref<128x128xbf16, #tpu.memory_space<vmem>>, vector<128x128xbf16>
      %cst = arith.constant dense<0.000000e+00> : vector<128x128xf32>
      %46 = tpu.matmul %43, %45, %cst {dimension_numbers = #tpu.dot_dimension_numbers<[1], [0], [0], [1], [0, 0, 1, 1], [], []>} : vector<128x128xbf16>, vector<128x128xbf16>, vector<128x128xf32> -> vector<128x128xf32>
      %47 = arith.addf %41, %46 : vector<128x128xf32>
      %c0_26 = arith.constant 0 : index
      %c0_27 = arith.constant 0 : index
      %48 = vector.load %arg18[%c0_26, %c0_27] : memref<128x128xf32, #tpu.memory_space<vmem>>, vector<128x128xf32>
      tpu.vector_store %arg18[%c0_26, %c0_27], %47 {strides = array<i32>} : memref<128x128xf32, #tpu.memory_space<vmem>>, vector<128x128xf32>,
    } else {
    }
    %c0_i32_15 = arith.constant 0 : i32
    %31 = arith.cmpi eq, %arg2, %c0_i32_15 : i32
    %32 = arith.extui %31 : i1 to i32
    %c0_i32_16 = arith.constant 0 : i32
    %33 = arith.cmpi ne, %32, %c0_i32_16 : i32
    scf.if %33 {
      %c0 = arith.constant 0 : index
      %c0_21 = arith.constant 0 : index
      %c0_22 = arith.constant 0 : index
      %41 = vector.load %arg11[%c0, %c0_21, %c0_22] : memref<1x8x128xf32, #tpu.memory_space<vmem>>, vector<1x8x128xf32>
      %42 = vector.shape_cast %41 : vector<1x8x128xf32> to vector<8x128xf32>
      %43 = vector.extract_strided_slice %42 {offsets = [0, 0], sizes = [1, 128], strides = [1, 1]} : vector<8x128xf32> to vector<1x128xf32>
      %44 = vector.extract_strided_slice %42 {offsets = [1, 0], sizes = [1, 128], strides = [1, 1]} : vector<8x128xf32> to vector<1x128xf32>
      %45 = vector.extract_strided_slice %42 {offsets = [2, 0], sizes = [1, 128], strides = [1, 1]} : vector<8x128xf32> to vector<1x128xf32>
      %46 = vector.extract_strided_slice %42 {offsets = [3, 0], sizes = [1, 128], strides = [1, 1]} : vector<8x128xf32> to vector<1x128xf32>
      %c0_23 = arith.constant 0 : index
      %c0_24 = arith.constant 0 : index
      %47 = vector.load %arg18[%c0_23, %c0_24] : memref<128x128xf32, #tpu.memory_space<vmem>>, vector<128x128xf32>
      %48 = vector.broadcast %43 : vector<1x128xf32> to vector<128x128xf32>
      %49 = arith.addf %47, %48 : vector<128x128xf32>
      %cst = arith.constant dense<0.000000e+00> : vector<1xf32>
      %50 = vector.multi_reduction <add>, %46, %cst [1] : vector<1x128xf32> to vector<1xf32>
      %51 = vector.shape_cast %50 : vector<1xf32> to vector<1x1xf32>
      %cst_25 = arith.constant 1.000000e+00 : f32
      %52 = vector.broadcast %cst_25 : f32 to vector<1x1xf32>
      %53 = arith.divf %52, %51 : vector<1x1xf32>
      %cst_26 = arith.constant dense<0.000000e+00> : vector<128xf32>
      %54 = vector.multi_reduction <add>, %49, %cst_26 [1] : vector<128x128xf32> to vector<128xf32>
      %55 = vector.shape_cast %54 : vector<128xf32> to vector<128x1xf32>
      %56 = vector.broadcast %53 : vector<1x1xf32> to vector<128x1xf32>
      %57 = arith.mulf %55, %56 : vector<128x1xf32>
      %58 = vector.broadcast %57 : vector<128x1xf32> to vector<128x128xf32>
      %59 = arith.subf %49, %58 : vector<128x128xf32>
      %60 = vector.broadcast %46 : vector<1x128xf32> to vector<128x128xf32>
      %61 = arith.mulf %59, %60 : vector<128x128xf32>
      %62 = arith.mulf %61, %61 : vector<128x128xf32>
      %cst_27 = arith.constant dense<0.000000e+00> : vector<128xf32>
      %63 = vector.multi_reduction <add>, %62, %cst_27 [1] : vector<128x128xf32> to vector<128xf32>
      %64 = vector.shape_cast %63 : vector<128xf32> to vector<128x1xf32>
      %65 = vector.broadcast %53 : vector<1x1xf32> to vector<128x1xf32>
      %66 = arith.mulf %64, %65 : vector<128x1xf32>
      %cst_28 = arith.constant 9.99999974E-6 : f32
      %67 = vector.broadcast %cst_28 : f32 to vector<128x1xf32>
      %68 = arith.addf %66, %67 : vector<128x1xf32>
      %69 = math.rsqrt %68 : vector<128x1xf32>
      %70 = vector.broadcast %69 : vector<128x1xf32> to vector<128x128xf32>
      %71 = arith.mulf %61, %70 : vector<128x128xf32>
      %72 = vector.broadcast %44 : vector<1x128xf32> to vector<128x128xf32>
      %73 = arith.mulf %71, %72 : vector<128x128xf32>
      %74 = vector.broadcast %45 : vector<1x128xf32> to vector<128x128xf32>
      %75 = arith.addf %73, %74 : vector<128x128xf32>
      %c0_i32_29 = arith.constant 0 : i32
      %76 = arith.cmpi sgt, %arg0, %c0_i32_29 : i32
      %cst_30 = arith.constant 0.000000e+00 : f32
      %77 = vector.broadcast %cst_30 : f32 to vector<128x128xf32>
      %78 = arith.cmpf olt, %75, %77 : vector<128x128xf32>
      %79 = vector.broadcast %76 : i1 to vector<128x128xi1>
      %80 = arith.andi %79, %78 : vector<128x128xi1>
      %cst_31 = arith.constant 0.00999999977 : f32
      %81 = vector.broadcast %cst_31 : f32 to vector<128x128xf32>
      %82 = arith.mulf %81, %75 : vector<128x128xf32>
      %83 = arith.select %80, %82, %75 : vector<128x128xi1>, vector<128x128xf32>
      %84 = arith.addi %8, %3 : i32
      %85 = tpu.assume_multiple %84, 128 : i32
      %86 = arith.index_cast %85 : i32 to index
      %c0_32 = arith.constant 0 : index
      %87 = vector.load %arg16[%86, %c0_32] : memref<256x128xf32, #tpu.memory_space<vmem>>, vector<128x128xf32>
      tpu.vector_store %arg16[%86, %c0_32], %83 {strides = array<i32>} : memref<256x128xf32, #tpu.memory_space<vmem>>, vector<128x128xf32>,
    } else {
    }
    %c1_i32_17 = arith.constant 1 : i32
    %34 = arith.cmpi eq, %arg0, %c1_i32_17 : i32
    %c0_i32_18 = arith.constant 0 : i32
    %35 = arith.cmpi eq, %arg1, %c0_i32_18 : i32
    %36 = arith.andi %34, %35 : i1
    %c0_i32_19 = arith.constant 0 : i32
    %37 = arith.cmpi eq, %arg2, %c0_i32_19 : i32
    %38 = arith.andi %36, %37 : i1
    %39 = arith.extui %38 : i1 to i32
    %c0_i32_20 = arith.constant 0 : i32
    %40 = arith.cmpi ne, %39, %c0_i32_20 : i32
    scf.if %40 {
      %c0 = arith.constant 0 : index
      %41 = memref.load %arg3[%c0] : memref<8xi32, #tpu.memory_space<smem>>
      %c0_i32_21 = arith.constant 0 : i32
      %42 = arith.addi %c0_i32_21, %41 : i32
      %43 = arith.index_cast %42 : i32 to index
      %c0_22 = arith.constant 0 : index
      %44 = vector.load %arg16[%43, %c0_22] : memref<256x128xf32, #tpu.memory_space<vmem>>, vector<1x128xf32>
      %c0_23 = arith.constant 0 : index
      %c0_24 = arith.constant 0 : index
      %45 = vector.load %arg19[%c0_23, %c0_24] : memref<8x128xf32, #tpu.memory_space<vmem>>, vector<1x128xf32>
      tpu.vector_store %arg19[%c0_23, %c0_24], %44 {strides = array<i32>} : memref<8x128xf32, #tpu.memory_space<vmem>>, vector<1x128xf32>,
      %c1 = arith.constant 1 : index
      %46 = memref.load %arg3[%c1] : memref<8xi32, #tpu.memory_space<smem>>
      %c0_i32_25 = arith.constant 0 : i32
      %47 = arith.addi %c0_i32_25, %46 : i32
      %48 = arith.index_cast %47 : i32 to index
      %c0_26 = arith.constant 0 : index
      %49 = vector.load %arg16[%48, %c0_26] : memref<256x128xf32, #tpu.memory_space<vmem>>, vector<1x128xf32>
      %c1_27 = arith.constant 1 : index
      %c0_28 = arith.constant 0 : index
      %50 = vector.load %arg19[%c1_27, %c0_28] : memref<8x128xf32, #tpu.memory_space<vmem>>, vector<1x128xf32>
      tpu.vector_store %arg19[%c1_27, %c0_28], %49 {strides = array<i32>} : memref<8x128xf32, #tpu.memory_space<vmem>>, vector<1x128xf32>,
      %c2 = arith.constant 2 : index
      %51 = memref.load %arg3[%c2] : memref<8xi32, #tpu.memory_space<smem>>
      %c0_i32_29 = arith.constant 0 : i32
      %52 = arith.addi %c0_i32_29, %51 : i32
      %53 = arith.index_cast %52 : i32 to index
      %c0_30 = arith.constant 0 : index
      %54 = vector.load %arg16[%53, %c0_30] : memref<256x128xf32, #tpu.memory_space<vmem>>, vector<1x128xf32>
      %c2_31 = arith.constant 2 : index
      %c0_32 = arith.constant 0 : index
      %55 = vector.load %arg19[%c2_31, %c0_32] : memref<8x128xf32, #tpu.memory_space<vmem>>, vector<1x128xf32>
      tpu.vector_store %arg19[%c2_31, %c0_32], %54 {strides = array<i32>} : memref<8x128xf32, #tpu.memory_space<vmem>>, vector<1x128xf32>,
      %c3 = arith.constant 3 : index
      %56 = memref.load %arg3[%c3] : memref<8xi32, #tpu.memory_space<smem>>
      %c0_i32_33 = arith.constant 0 : i32
      %57 = arith.addi %c0_i32_33, %56 : i32
      %58 = arith.index_cast %57 : i32 to index
      %c0_34 = arith.constant 0 : index
      %59 = vector.load %arg16[%58, %c0_34] : memref<256x128xf32, #tpu.memory_space<vmem>>, vector<1x128xf32>
      %c3_35 = arith.constant 3 : index
      %c0_36 = arith.constant 0 : index
      %60 = vector.load %arg19[%c3_35, %c0_36] : memref<8x128xf32, #tpu.memory_space<vmem>>, vector<1x128xf32>
      tpu.vector_store %arg19[%c3_35, %c0_36], %59 {strides = array<i32>} : memref<8x128xf32, #tpu.memory_space<vmem>>, vector<1x128xf32>,
      %c4 = arith.constant 4 : index
      %61 = memref.load %arg3[%c4] : memref<8xi32, #tpu.memory_space<smem>>
      %c0_i32_37 = arith.constant 0 : i32
      %62 = arith.addi %c0_i32_37, %61 : i32
      %63 = arith.index_cast %62 : i32 to index
      %c0_38 = arith.constant 0 : index
      %64 = vector.load %arg16[%63, %c0_38] : memref<256x128xf32, #tpu.memory_space<vmem>>, vector<1x128xf32>
      %c4_39 = arith.constant 4 : index
      %c0_40 = arith.constant 0 : index
      %65 = vector.load %arg19[%c4_39, %c0_40] : memref<8x128xf32, #tpu.memory_space<vmem>>, vector<1x128xf32>
      tpu.vector_store %arg19[%c4_39, %c0_40], %64 {strides = array<i32>} : memref<8x128xf32, #tpu.memory_space<vmem>>, vector<1x128xf32>,
      %c5 = arith.constant 5 : index
      %66 = memref.load %arg3[%c5] : memref<8xi32, #tpu.memory_space<smem>>
      %c0_i32_41 = arith.constant 0 : i32
      %67 = arith.addi %c0_i32_41, %66 : i32
      %68 = arith.index_cast %67 : i32 to index
      %c0_42 = arith.constant 0 : index
      %69 = vector.load %arg16[%68, %c0_42] : memref<256x128xf32, #tpu.memory_space<vmem>>, vector<1x128xf32>
      %c5_43 = arith.constant 5 : index
      %c0_44 = arith.constant 0 : index
      %70 = vector.load %arg19[%c5_43, %c0_44] : memref<8x128xf32, #tpu.memory_space<vmem>>, vector<1x128xf32>
      tpu.vector_store %arg19[%c5_43, %c0_44], %69 {strides = array<i32>} : memref<8x128xf32, #tpu.memory_space<vmem>>, vector<1x128xf32>,
      %c6 = arith.constant 6 : index
      %71 = memref.load %arg3[%c6] : memref<8xi32, #tpu.memory_space<smem>>
      %c0_i32_45 = arith.constant 0 : i32
      %72 = arith.addi %c0_i32_45, %71 : i32
      %73 = arith.index_cast %72 : i32 to index
      %c0_46 = arith.constant 0 : index
      %74 = vector.load %arg16[%73, %c0_46] : memref<256x128xf32, #tpu.memory_space<vmem>>, vector<1x128xf32>
      %c6_47 = arith.constant 6 : index
      %c0_48 = arith.constant 0 : index
      %75 = vector.load %arg19[%c6_47, %c0_48] : memref<8x128xf32, #tpu.memory_space<vmem>>, vector<1x128xf32>
      tpu.vector_store %arg19[%c6_47, %c0_48], %74 {strides = array<i32>} : memref<8x128xf32, #tpu.memory_space<vmem>>, vector<1x128xf32>,
      %c7 = arith.constant 7 : index
      %76 = memref.load %arg3[%c7] : memref<8xi32, #tpu.memory_space<smem>>
      %c0_i32_49 = arith.constant 0 : i32
      %77 = arith.addi %c0_i32_49, %76 : i32
      %78 = arith.index_cast %77 : i32 to index
      %c0_50 = arith.constant 0 : index
      %79 = vector.load %arg16[%78, %c0_50] : memref<256x128xf32, #tpu.memory_space<vmem>>, vector<1x128xf32>
      %c7_51 = arith.constant 7 : index
      %c0_52 = arith.constant 0 : index
      %80 = vector.load %arg19[%c7_51, %c0_52] : memref<8x128xf32, #tpu.memory_space<vmem>>, vector<1x128xf32>
      tpu.vector_store %arg19[%c7_51, %c0_52], %79 {strides = array<i32>} : memref<8x128xf32, #tpu.memory_space<vmem>>, vector<1x128xf32>,
      %c0_53 = arith.constant 0 : index
      %c0_54 = arith.constant 0 : index
      %81 = vector.load %arg19[%c0_53, %c0_54] : memref<8x128xf32, #tpu.memory_space<vmem>>, vector<8x128xf32>
      %c0_55 = arith.constant 0 : index
      %c0_56 = arith.constant 0 : index
      %82 = vector.load %arg12[%c0_55, %c0_56] : memref<128x128xf32, #tpu.memory_space<vmem>>, vector<128x128xf32>
      %cst = arith.constant dense<0.000000e+00> : vector<8x128xf32>
      %83 = tpu.matmul %81, %82, %cst {dimension_numbers = #tpu.dot_dimension_numbers<[1], [0], [0], [1], [0, 0, 1, 1], [], []>} : vector<8x128xf32>, vector<128x128xf32>, vector<8x128xf32> -> vector<8x128xf32>
      %c0_57 = arith.constant 0 : index
      %c0_58 = arith.constant 0 : index
      %84 = vector.load %arg13[%c0_57, %c0_58] : memref<1x128xf32, #tpu.memory_space<vmem>>, vector<1x128xf32>
      %85 = vector.broadcast %84 : vector<1x128xf32> to vector<8x128xf32>
      %86 = arith.addf %83, %85 : vector<8x128xf32>
      %87 = tpu.iota {dimensions = array<i32: 1>} : vector<8x128xi32>
      %c8_i32 = arith.constant 8 : i32
      %88 = vector.broadcast %c8_i32 : i32 to vector<8x128xi32>
      %89 = arith.cmpi slt, %87, %88 : vector<8x128xi32>
      %cst_59 = arith.constant -1.000000e+30 : f32
      %90 = vector.broadcast %cst_59 : f32 to vector<8x128xf32>
      %91 = arith.select %89, %86, %90 : vector<8x128xi1>, vector<8x128xf32>
      %cst_60 = arith.constant dense<0xFF800000> : vector<8xf32>
      %92 = vector.multi_reduction <maximumf>, %91, %cst_60 [1] : vector<8x128xf32> to vector<8xf32>
      %93 = vector.shape_cast %92 : vector<8xf32> to vector<8x1xf32>
      %94 = vector.broadcast %93 : vector<8x1xf32> to vector<8x128xf32>
      %95 = arith.subf %91, %94 : vector<8x128xf32>
      %96 = math.exp %95 : vector<8x128xf32>
      %cst_61 = arith.constant 0.000000e+00 : f32
      %97 = vector.broadcast %cst_61 : f32 to vector<8x128xf32>
      %98 = arith.select %89, %96, %97 : vector<8x128xi1>, vector<8x128xf32>
      %99 = vector.broadcast %93 : vector<8x1xf32> to vector<8x128xf32>
      %100 = arith.subf %91, %99 : vector<8x128xf32>
      %cst_62 = arith.constant dense<0.000000e+00> : vector<8xf32>
      %101 = vector.multi_reduction <add>, %98, %cst_62 [1] : vector<8x128xf32> to vector<8xf32>
      %102 = vector.shape_cast %101 : vector<8xf32> to vector<8x1xf32>
      %103 = math.log %102 : vector<8x1xf32>
      %104 = vector.broadcast %103 : vector<8x1xf32> to vector<8x128xf32>
      %105 = arith.subf %100, %104 : vector<8x128xf32>
      %cst_63 = arith.constant 6.000000e-01 : f32
      %106 = vector.broadcast %cst_63 : f32 to vector<8x128xf32>
      %107 = arith.mulf %105, %106 : vector<8x128xf32>
      %c0_64 = arith.constant 0 : index
      %c0_65 = arith.constant 0 : index
      %108 = vector.load %arg14[%c0_64, %c0_65] : memref<8x128xf32, #tpu.memory_space<vmem>>, vector<8x128xf32>
      %cst_66 = arith.constant -1.000000e+30 : f32
      %109 = vector.broadcast %cst_66 : f32 to vector<8x128xf32>
      %110 = arith.select %89, %108, %109 : vector<8x128xi1>, vector<8x128xf32>
      %cst_67 = arith.constant dense<0xFF800000> : vector<8xf32>
      %111 = vector.multi_reduction <maximumf>, %110, %cst_67 [1] : vector<8x128xf32> to vector<8xf32>
      %112 = vector.shape_cast %111 : vector<8xf32> to vector<8x1xf32>
      %113 = vector.broadcast %112 : vector<8x1xf32> to vector<8x128xf32>
      %114 = arith.subf %110, %113 : vector<8x128xf32>
      %115 = math.exp %114 : vector<8x128xf32>
      %cst_68 = arith.constant 0.000000e+00 : f32
      %116 = vector.broadcast %cst_68 : f32 to vector<8x128xf32>
      %117 = arith.select %89, %115, %116 : vector<8x128xi1>, vector<8x128xf32>
      %118 = vector.broadcast %112 : vector<8x1xf32> to vector<8x128xf32>
      %119 = arith.subf %110, %118 : vector<8x128xf32>
      %cst_69 = arith.constant dense<0.000000e+00> : vector<8xf32>
      %120 = vector.multi_reduction <add>, %117, %cst_69 [1] : vector<8x128xf32> to vector<8xf32>
      %121 = vector.shape_cast %120 : vector<8xf32> to vector<8x1xf32>
      %122 = math.log %121 : vector<8x1xf32>
      %123 = vector.broadcast %122 : vector<8x1xf32> to vector<8x128xf32>
      %124 = arith.subf %119, %123 : vector<8x128xf32>
      %cst_70 = arith.constant 4.000000e-01 : f32
      %125 = vector.broadcast %cst_70 : f32 to vector<8x128xf32>
      %126 = arith.mulf %124, %125 : vector<8x128xf32>
      %127 = arith.addf %107, %126 : vector<8x128xf32>
      %cst_71 = arith.constant 0.000000e+00 : f32
      %128 = vector.broadcast %cst_71 : f32 to vector<8x128xf32>
      %129 = arith.select %89, %127, %128 : vector<8x128xi1>, vector<8x128xf32>
      %c0_72 = arith.constant 0 : index
      %c0_73 = arith.constant 0 : index
      %130 = vector.load %arg15[%c0_72, %c0_73] : memref<8x128xf32, #tpu.memory_space<vmem>>, vector<8x128xf32>
      tpu.vector_store %arg15[%c0_72, %c0_73], %129 {strides = array<i32>} : memref<8x128xf32, #tpu.memory_space<vmem>>, vector<8x128xf32>,
    } else {
    }
    return
  }
  func.func @transform_0(%arg0: i32, %arg1: i32, %arg2: i32, %arg3: memref<8xi32, #tpu.memory_space<smem>>, %arg4: memref<2xi32, #tpu.memory_space<smem>>, %arg5: memref<2xi32, #tpu.memory_space<smem>>, %arg6: memref<2xi32, #tpu.memory_space<smem>>, %arg7: memref<2xi32, #tpu.memory_space<smem>>) -> (i32, i32, i32) {
    %c1_i32 = arith.constant 1 : i32
    %0 = arith.muli %arg0, %c1_i32 : i32
    %1 = arith.addi %0, %arg1 : i32
    %c1_i32_0 = arith.constant 1 : i32
    %2 = arith.muli %1, %c1_i32_0 : i32
    %3 = arith.addi %2, %arg2 : i32
    %4 = arith.index_cast %3 : i32 to index
    %5 = memref.load %arg5[%4] : memref<2xi32, #tpu.memory_space<smem>>
    %6 = arith.index_cast %3 : i32 to index
    %7 = memref.load %arg6[%6] : memref<2xi32, #tpu.memory_space<smem>>
    %8 = arith.index_cast %3 : i32 to index
    %9 = memref.load %arg7[%8] : memref<2xi32, #tpu.memory_space<smem>>
    %c0_i32 = arith.constant 0 : i32
    return %5, %7, %9 : i32, i32, i32
  }
  func.func @transform_1(%arg0: i32, %arg1: i32, %arg2: i32, %arg3: memref<8xi32, #tpu.memory_space<smem>>, %arg4: memref<2xi32, #tpu.memory_space<smem>>, %arg5: memref<2xi32, #tpu.memory_space<smem>>, %arg6: memref<2xi32, #tpu.memory_space<smem>>, %arg7: memref<2xi32, #tpu.memory_space<smem>>) -> (i32, i32) {
    %c0_i32 = arith.constant 0 : i32
    %0 = arith.cmpi eq, %arg0, %c0_i32 : i32
    %c0_i32_0 = arith.constant 0 : i32
    %1 = arith.cmpi eq, %arg1, %c0_i32_0 : i32
    %2 = arith.andi %0, %1 : i1
    %c0_i32_1 = arith.constant 0 : i32
    %3 = arith.select %2, %arg2, %c0_i32_1 : i32
    %c0_i32_2 = arith.constant 0 : i32
    %c0_i32_3 = arith.constant 0 : i32
    return %3, %c0_i32_2 : i32, i32
  }
  func.func @transform_2(%arg0: i32, %arg1: i32, %arg2: i32, %arg3: memref<8xi32, #tpu.memory_space<smem>>, %arg4: memref<2xi32, #tpu.memory_space<smem>>, %arg5: memref<2xi32, #tpu.memory_space<smem>>, %arg6: memref<2xi32, #tpu.memory_space<smem>>, %arg7: memref<2xi32, #tpu.memory_space<smem>>) -> (i32, i32, i32) {
    %c0_i32 = arith.constant 0 : i32
    %c0_i32_0 = arith.constant 0 : i32
    %c0_i32_1 = arith.constant 0 : i32
    return %arg0, %c0_i32, %c0_i32_0 : i32, i32, i32
  }
  func.func @transform_3(%arg0: i32, %arg1: i32, %arg2: i32, %arg3: memref<8xi32, #tpu.memory_space<smem>>, %arg4: memref<2xi32, #tpu.memory_space<smem>>, %arg5: memref<2xi32, #tpu.memory_space<smem>>, %arg6: memref<2xi32, #tpu.memory_space<smem>>, %arg7: memref<2xi32, #tpu.memory_space<smem>>) -> (i32, i32, i32) {
    %c0_i32 = arith.constant 0 : i32
    %c0_i32_0 = arith.constant 0 : i32
    %c0_i32_1 = arith.constant 0 : i32
    return %arg0, %c0_i32, %c0_i32_0 : i32, i32, i32
  }
  func.func @transform_4(%arg0: i32, %arg1: i32, %arg2: i32, %arg3: memref<8xi32, #tpu.memory_space<smem>>, %arg4: memref<2xi32, #tpu.memory_space<smem>>, %arg5: memref<2xi32, #tpu.memory_space<smem>>, %arg6: memref<2xi32, #tpu.memory_space<smem>>, %arg7: memref<2xi32, #tpu.memory_space<smem>>) -> (i32, i32) {
    %c0_i32 = arith.constant 0 : i32
    %c0_i32_0 = arith.constant 0 : i32
    %c0_i32_1 = arith.constant 0 : i32
    return %c0_i32, %c0_i32_0 : i32, i32
  }
  func.func @transform_5(%arg0: i32, %arg1: i32, %arg2: i32, %arg3: memref<8xi32, #tpu.memory_space<smem>>, %arg4: memref<2xi32, #tpu.memory_space<smem>>, %arg5: memref<2xi32, #tpu.memory_space<smem>>, %arg6: memref<2xi32, #tpu.memory_space<smem>>, %arg7: memref<2xi32, #tpu.memory_space<smem>>) -> (i32, i32) {
    %c0_i32 = arith.constant 0 : i32
    %c0_i32_0 = arith.constant 0 : i32
    %c0_i32_1 = arith.constant 0 : i32
    return %c0_i32, %c0_i32_0 : i32, i32
  }
  func.func @transform_6(%arg0: i32, %arg1: i32, %arg2: i32, %arg3: memref<8xi32, #tpu.memory_space<smem>>, %arg4: memref<2xi32, #tpu.memory_space<smem>>, %arg5: memref<2xi32, #tpu.memory_space<smem>>, %arg6: memref<2xi32, #tpu.memory_space<smem>>, %arg7: memref<2xi32, #tpu.memory_space<smem>>) -> (i32, i32) {
    %c0_i32 = arith.constant 0 : i32
    %c0_i32_0 = arith.constant 0 : i32
    %c0_i32_1 = arith.constant 0 : i32
    return %c0_i32, %c0_i32_0 : i32, i32
  }
  func.func @transform_7(%arg0: i32, %arg1: i32, %arg2: i32, %arg3: memref<8xi32, #tpu.memory_space<smem>>, %arg4: memref<2xi32, #tpu.memory_space<smem>>, %arg5: memref<2xi32, #tpu.memory_space<smem>>, %arg6: memref<2xi32, #tpu.memory_space<smem>>, %arg7: memref<2xi32, #tpu.memory_space<smem>>) -> (i32, i32) {
    %c0_i32 = arith.constant 0 : i32
    %c0_i32_0 = arith.constant 0 : i32
    %c0_i32_1 = arith.constant 0 : i32
    return %c0_i32, %c0_i32_0 : i32, i32
  }
}

</mosaic_0001>

<bundles_post_ra>
// kernel: tpu_custom_call.1
= control target key start
LH: loop header
LB: loop body
LE: loop exit
PB: predicated region body
PF: predicated region fallthrough
CT: control target
= control target key end

     0   :  { %s2808_s27 = smov [#allocation7]   ;;  %s2809_s28 = smov [#allocation8]   ;;  %s3783_s0 = inlined_call_operand.hbm [shape: s32[8], index: 0, kind: input, shape index: {}]   ;;  %s3784_s5 = inlined_call_operand.hbm [shape: bf16[2,128,128], index: 5, kind: input, shape index: {}]   ;;  %s3785_s6 = inlined_call_operand.hbm [shape: f32[128,128], index: 6, kind: input, shape index: {}]   ;;  %s3786_s7 = inlined_call_operand.hbm [shape: f32[2,128,128], index: 7, kind: input, shape index: {}]   ;;  %s3787_s8 = inlined_call_operand.hbm [shape: f32[2,8,128], index: 8, kind: input, shape index: {}]   ;;  %s3788_s9 = inlined_call_operand.hbm [shape: f32[128,128], index: 9, kind: input, shape index: {}]   ;;  %s3789_s10 = inlined_call_operand.hbm [shape: f32[1,128], index: 10, kind: input, shape index: {}]   ;;  %s3790_s11 = inlined_call_operand.vmem [shape: f32[8,128], index: 11, kind: input, shape index: {}]   ;;  %s3791_s12 = inlined_call_operand.hbm [shape: f32[8,128], index: 12, kind: output, shape index: {}]   ;;  %s3792_s1 = inlined_call_operand.hbm [shape: s32[2], index: 1, kind: input, shape index: {}]   ;;  %s3793_s2 = inlined_call_operand.vmem [shape: s32[2], index: 2, kind: input, shape index: {}]   ;;  %s3794_s3 = inlined_call_operand.vmem [shape: s32[2], index: 3, kind: input, shape index: {}]   ;;  %s3795_s4 = inlined_call_operand.hbm [shape: s32[2], index: 4, kind: input, shape index: {}]  }
   0x1   :  { %3813 = sst [smem:[#allocation46_spill]] %s3784_s5  ;;  %s18_s23 = sshll.u32 %s3783_s0, 4  ;;  %s19_s23 = int_to_ptr.hbm [resolvable:$true] %s18_s23 }
   0x2   :  { %3814 = sst [smem:[#allocation47_spill]] %s3785_s6  ;;  %s23_s26 = sshll.u32 %s3792_s1, 4  ;;  %s24_s26 = int_to_ptr.hbm [resolvable:$true] %s23_s26 }
   0x3   :  { %3815 = sst [smem:[#allocation48_spill]] %s3788_s9  ;;  %s28_s13 = sshll.u32 %s3793_s2, 4  ;;  %s29_s13 = int_to_ptr.vmem [resolvable:$true] %s28_s13 }
   0x4   :  { %3816 = sst [smem:[#allocation49_spill]] %s3789_s10  ;;  %s33_s16 = sshll.u32 %s3794_s3, 4  ;;  %s34_s16 = int_to_ptr.vmem [resolvable:$true] %s33_s16 }
   0x5   :  { %3817 = sst [smem:[#allocation50_spill]] %s3790_s11  ;;  %s2810_s0 = smov [#allocation9]  }
   0x6   :  { %3818 = sst [smem:[#allocation51_spill]] %s3791_s12  ;;  %s2811_s17 = smov [#allocation10]  }
   0x7   :  { %21 = dma.hbm_to_smem %s19_s23, 16, %s2808_s27, [#allocation6] }
   0x8   :  { %26 = dma.hbm_to_smem %s24_s26, 16, %s2809_s28, [#allocation6] }
   0x9   :  { %31 = dma.vmem_to_smem %s29_s13, 16, %s2810_s0, [#allocation6] }
   0xa   :  { %36 = dma.vmem_to_smem %s34_s16, 16, %s2811_s17, [#allocation6] }
   0xb   :  { %s38_s19 = sshll.u32 %s3795_s4, 4  ;;  %s2812_s20 = smov [#allocation11]   ;;  %s39_s19 = int_to_ptr.hbm [resolvable:$true] %s38_s19 }
   0xc   :  { %41 = dma.hbm_to_smem %s39_s19, 16, %s2812_s20, [#allocation6] }
   0xd   :  { %2742 = dma.done.wait [#allocation6], 80 }
   0xe   :  { %2743 = vsyncadd [#allocation6], 4294967216 }
   0xf   :  { %44 = sfence }
  0x10   :  { %45 = vsyncpa [#allocation13], 0 }
  0x11   :  { %47 = vsyncpa [#allocation13 + $0x1], 0 }
  0x12   :  { %48 = vsyncpa [#allocation16], 0 }
  0x13   :  { %50 = vsyncpa [#allocation16 + $0x1], 0 }
  0x14   :  { %51 = vsyncpa [#allocation19], 0 }
  0x15   :  { %53 = vsyncpa [#allocation19 + $0x1], 0 }
  0x16   :  { %54 = vsyncpa [#allocation22], 0 }
  0x17   :  { %55 = vsyncpa [#allocation14], 0  ;;  %s2902_s2 = smov 0   ;;  %s2904_s3 = smov 0  }
  0x18   :  { %s2906_s21 = smov 0   ;;  %s2908_s4 = smov 0  }
  0x19   :  { %s2910_s22 = smov 0   ;;  %s2912_s23 = smov 0  }
  0x1a   :  { %s2914_s24 = smov 0   ;;  %s2916_s25 = smov 0  }
  0x1b   :  { %s2918_s26 = smov 0  }
  0x1c LB: > { %3819 = sst [smem:[#allocation38_spill]] %s2798_s24  ;;  %s2946_s27 = sadd.s32 4294967295, %s2806_s26   ;;  %s2806_s26 = sphi %s2918_s26, %s61_s26   ;;  %s2802_s25 = sphi %s2916_s25, %s3881_s25   ;;  %s2798_s24 = sphi %s2914_s24, %s3880_s24   ;;  %s2794_s23 = sphi %s2912_s23, %s3879_s23   ;;  %s2790_s22 = sphi %s2910_s22, %s3878_s22   ;;  %s2786_s4 = sphi %s2908_s4, %s3877_s4   ;;  %s2782_s21 = sphi %s2906_s21, %s3876_s21   ;;  %s2778_s3 = sphi %s2904_s3, %s3875_s3   ;;  %s2774_s2 = sphi %s2902_s2, %s3874_s2  }
  0x1d   : > { %3820 = sst [smem:[#allocation39_spill]] %s2946_s27  ;;  %p176_p0 = scmp.ne.s32.totalorder %s2778_s3, %s2774_s2 }
  0x1e   : > { %p3812_p1 = scmp.eq.s32.totalorder %s2946_s27, 0  ;;  %p1902_p2 = scmp.ge.s32.totalorder %s2806_s26, 1 }
  0x1f   : > { %p297_p3 = scmp.lt.s32.totalorder %s2806_s26, 3  ;;  %s3823_s9 = sld [smem:[#allocation48_spill]] }
  0x20   : > { %p2954_p4 = por %p176_p0, %p3812_p1  ;;  %s2813_s15 = smov [#allocation20]  }
  0x21   : > { %p2961_p5 = pnand %p1902_p2, %p297_p3  ;;  %s310_s16 = sshll.u32 %s2813_s15, 4  ;;  %s311_s16 = int_to_ptr.vmem [resolvable:$true] %s310_s16 }
  0x22   : > { %s3821_s28 = scalar_select %p2954_p4, 1, 0 }
  0x23   : > { %p2274_p6 = pneg %p2961_p5  ;;  %p109_p8 = scmp.eq.s32.totalorder %s2806_s26, 0 }
  0x24   : > { %3822 = sst [smem:[#allocation40_spill]] %s3821_s28  ;;  %p2302_p9 = scmp.lt.s32.totalorder %s2806_s26, 2 }
  0x25   : > { %s308_s13 = sshll.u32 %s3823_s9, 4  ;;  %p2969_p7 = pnand %p2274_p6, %p3812_p1  ;;  %s309_s13 = int_to_ptr.hbm [resolvable:$true] %s308_s13 }
  0x26   : > { %s3797_s17 = smov 128   ;;  %s3798_s1 = smov 8  }
  0x27   : > { %2277 = dma.hbm_to_vmem [thread:$0]  (!%p2969_p7), %s309_s13, 2048, %s311_s16, [#allocation19], %s3797_s17, %s3797_s17, %s3798_s1  }
  0x28   : > { %s3796_s18 = sand.u32 1, %s2806_s26   ;;  %s3826_s6 = sld [smem:[#allocation47_spill]] }
  0x29   : > { %p2291_p10 = pnand %p2302_p9, %p109_p8  ;;  %s2816_s29 = smov [#allocation15]  }
  0x2a   : > { %s386_s30 = sshll.u32 %s2816_s29, 4  ;;  %s3827_s10 = sld [smem:[#allocation49_spill]]  ;;  %s387_s30 = int_to_ptr.vmem [resolvable:$true] %s386_s30 }
  0x2b   : > { %s2993_s16 = scalar_lea.sflag [#allocation16], %s3796_s18  ;;  %s2817_s19 = smov [#allocation21]  }
  0x2c   : > { %s325_s20 = sshll.u32 %s2817_s19, 4  ;;  %s80_s9 = sadd.s32 1, %s2802_s25  ;;  %s326_s20 = int_to_ptr.vmem [resolvable:$true] %s325_s20 }
  0x2d   : > { %s86_s29 = sld [smem:[#allocation9 + %s2802_s25]]  ;;  %p82_p11 = scmp.ge.s32.totalorder %s80_s9, 2 }
  0x2e   : > { %s384_s2 = sshll.u32 %s3826_s6, 4  ;;  %s87_s15 = sld [smem:[#allocation10 + %s2802_s25]]  ;;  %s385_s2 = int_to_ptr.hbm [resolvable:$true] %s384_s2 }
  0x2f   : > { %2293 = dma.hbm_to_vmem [thread:$0]  (!%p2291_p10), %s385_s2, 2048, %s387_s30, %s2993_s16, %s3797_s17, %s3797_s17, %s3798_s1  }
  0x30   : > { %s323_s13 = sshll.u32 %s3827_s10, 4  ;;  %s88_s18 = sld [smem:[#allocation11 + %s2802_s25]]  ;;  %s324_s13 = int_to_ptr.hbm [resolvable:$true] %s323_s13 }
  0x31   : > { %2280 = dma.hbm_to_vmem [thread:$0]  (!%p2969_p7), %s324_s13, 16, %s326_s20, [#allocation22]  }
  0x32   : > { %s101_s6 = sadd.s32 1, %s2794_s23  ;;  %s3883_s9 = smov (%p82_p11, %s80_s9), 0 }
  0x33   : > { %3828 = sst [smem:[#allocation41_spill]] %s3883_s9  ;;  %p108_p12 = scmp.ne.s32.totalorder %s2794_s23, %s2790_s22 }
  0x34   : > { %p114_p13 = scmp.ne.s32.totalorder %s2790_s22, %s2786_s4  ;;  %s91_s2 = sld [smem:[#allocation9 + %s3883_s9]] }
  0x35   : > { %s3802_s30 = sand.u32 1, %s2794_s23   ;;  %s92_s0 = sld [smem:[#allocation10 + %s3883_s9]] }
  0x36   : > { %p3017_p0 = por %p109_p8, %p108_p12  ;;  %s93_s19 = sld [smem:[#allocation11 + %s3883_s9]] }
  0x37   : > { %p3024_p2 = por %p3812_p1, %p114_p13  ;;  %s1906_s4 = sshll.u32 %s3802_s30, 6 }
  0x38   : > { %p3034_p3 = pnand %p2302_p9, %p3017_p0  ;;  %s343_s12 = scalar_lea.vmem [#allocation12], %s1906_s4 }
  0x39   : > { %s3830_s20 = scalar_select %p3024_p2, 1, 0 }
  0x3a   : > { %s2250_s1 = scalar_select %p3017_p0, [#allocation9], [#allocation24] }
  0x3b   : > { %3831 = sst [smem:[#allocation42_spill]] %s3830_s20  ;;  %s94_s10 = ssub.s32 %s86_s29, %s91_s2 }
  0x3c   : > { %s3040_s11 = sshll.u32 %s343_s12, 4  ;;  %s95_s24 = ssub.s32 %s87_s15, %s92_s0 }
  0x3d   : > { %3833 = sst [smem:[#allocation43_spill]] %s3040_s11  ;;  %s96_s30 = sor.u32 %s95_s24, %s94_s10 }
  0x3e   : > { %s97_s28 = ssub.s32 %s88_s18, %s93_s19  ;;  %s3885_s1 = smov (!%p2302_p9, %s2250_s1), [#allocation27] }
  0x3f   : > { %s98_s27 = sor.u32 %s97_s28, %s96_s30  ;;  %s163_s15 = sadd.s32 1, %s2782_s21 }
  0x40   : > { %p99_p6 = scmp.eq.s32.totalorder %s98_s27, 0  ;;  %p170_p10 = scmp.ne.s32.totalorder %s2782_s21, %s2778_s3 }
  0x41   : > { %s2251_s20 = scalar_select %p3017_p0, %s2802_s25, 0 }
  0x42   : > { %s3047_s29 = scalar_select %p99_p6, %s2794_s23, %s101_s6  }
  0x43   : > { %s3887_s20 = smov (!%p2302_p9, %s2251_s20), 0  ;;  %s160_s6 = ssub.s32 %s2802_s25, %s3883_s9 }
  0x44   : > { %3834 = sst [smem:[#allocation44_spill]] %s3047_s29  ;;  %p161_p7 = scmp.eq.s32.totalorder %s160_s6, 0 }
  0x45   : > { %s2252_s12 = scalar_select %p3017_p0, [#allocation10], [#allocation25] }
  0x46   : > { %s346_s10 = sld [smem:[%s3885_s1 + %s3887_s20]]  ;;  %s3810_s2 = sand.u32 1, %s2782_s21  }
  0x47   : > { %s3889_s12 = smov (!%p2302_p9, %s2252_s12), [#allocation28]  ;;  %s1912_s0 = sshll.u32 %s3810_s2, 7 }
  0x48   : > { %s2254_s24 = scalar_select %p3017_p0, [#allocation11], [#allocation26] }
  0x49   : > { %s347_s27 = sld [smem:[%s3889_s12 + %s3887_s20]]  ;;  %p3074_p11 = por %p170_p10, %p109_p8 }
  0x4a   : > { %s3891_s24 = smov (!%p2302_p9, %s2254_s24), [#allocation29]  ;;  %s2011_s4 = sshll.u32 %s2802_s25, 7 }
  0x4b   : > { %s348_s28 = sld [smem:[%s3891_s24 + %s3887_s20]]  ;;  %s405_s24 = scalar_lea.hbm %s3786_s7, %s2011_s4 }
  0x4c   : > { %s1908_s18 = sshll.u32 %s346_s10, 4  ;;  %s3837_s5 = sld [smem:[#allocation46_spill]] }
  0x4d   : > { %s3070_s1 = scalar_select %p161_p7, %s2782_s21, %s163_s15  }
  0x4e   : > { %s400_s29 = scalar_lea.vmem [#allocation17], %s1912_s0  ;;  %p2592_p12 = pneg %p3034_p3 }
  0x4f   : > { %s1907_s30 = sshll.u32 %s347_s27, 4  ;;  %3835 = sst [smem:[#allocation45_spill]] %s3070_s1 }
  0x50   : > { %s406_s27 = sshll.u32 %s405_s24, 4  ;;  %s408_s1 = sshll.u32 %s400_s29, 4  ;;  %s3085_s27 = int_to_ptr.hbm [resolvable:$true] %s406_s27  ;;  %s409_s1 = int_to_ptr.vmem [resolvable:$true] %s408_s1 }
  0x51   : > { %s352_s19 = sadd.s32 %s1907_s30, %s348_s28  ;;  %s3838_s28 = sand.u32 1, %s2794_s23  }
  0x52   : > { %s354_s12 = sadd.s32 %s1908_s18, %s352_s19  ;;  %s340_s18 = scalar_lea.sflag [#allocation13], %s3838_s28 }
  0x53   : > { %s1909_s6 = sshll.u32 %s354_s12, 2  ;;  %s2595_s2 = scalar_lea.hbm %s3837_s5, 128 }
  0x54   : > { %s356_s15 = scalar_lea.hbm %s3837_s5, %s1909_s6 }
  0x55   : > { %s357_s9 = sshll.u32 %s356_s15, 4  ;;  %s358_s9 = int_to_ptr.hbm [resolvable:$true] %s357_s9 }
  0x56   : > { %s2588_s30 = sshra.s32 %s358_s9, 4  ;;  %s2589_s30 = int_to_ptr.hbm [resolvable:$true] %s2588_s30 }
  0x57   : > { %s2590_s19 = scalar_lea.hbm %s2589_s30, 64  ;;  %p2596_p6 = scmp.lt.s32.totalorder %s2589_s30, %s3837_s5 }
  0x58   : > { %p2591_p8 = scmp.ne.s32.totalorder %s2589_s30, %s2590_s19  ;;  %p2597_p7 = scmp.lt.s32.totalorder %s2595_s2, %s2590_s19 }
  0x5a   : > { %p2593_p13 = pnand %p2592_p12, %p2591_p8  ;;  %p2598_p10 = por %p2597_p7, %p2596_p6 }
  0x5c   : > { %p2594_p0 = pneg %p2593_p13 }
  0x5e   : > { %p2599_p1 = pnand %p2598_p10, %p2594_p0 }
  0x60   : > { %2602 = shalt.err (!%p2599_p1)
}
  0x61   : > { %s2818_s29 = smov 64   ;;  %s3839_s0 = sld [smem:[#allocation43_spill]] }
  0x62   : > { %s2819_s10 = smov 4   ;;  %p2294_p8 = pnand %p2302_p9, %p3074_p11 }
  0x63   : > { %s3841_s6 = sand.u32 1, %s2782_s21   ;;  %s1916_s28 = sshll.u32 %s2802_s25, 3 }
  0x64   : > { %s1915_s15 = sshll.u32 %s3841_s6, 3  ;;  %s3842_s30 = smov 8  }
  0x65   : > { %s3843_s19 = smov 128   ;;  %s426_s2 = scalar_lea.hbm %s3787_s8, %s1916_s28 }
  0x66   : > { %2296 = dma.hbm_to_vmem [thread:$0]  (!%p2294_p8), %s3085_s27, 2048, %s409_s1, %s2993_s16, %s3843_s19, %s3843_s19, %s3842_s30  }
  0x67   : > { %s3840_s24 = int_to_ptr.vmem [resolvable:$true] %s3839_s0  ;;  %s422_s12 = scalar_lea.vmem [#allocation18], %s1915_s15 }
  0x68   : > { %2290 = dma.hbm_to_vmem [thread:$0]  (!%p3034_p3), %s358_s9, 1024, %s3840_s24, %s340_s18, %s2818_s29, %s2818_s29, %s2819_s10  }
  0x69   : > { %s430_s20 = sshll.u32 %s422_s12, 4  ;;  %s428_s5 = sshll.u32 %s426_s2, 4  ;;  %s431_s20 = int_to_ptr.vmem [resolvable:$true] %s430_s20  ;;  %s429_s5 = int_to_ptr.hbm [resolvable:$true] %s428_s5 }
  0x6a   : > { %s3844_s17 = sand.u32 1, %s2806_s26   ;;  %439 = sbr.rel (%p2961_p5) target bundleno = 1531 (0x5fb), region = 48 }
  0x6b   : > { %s419_s9 = scalar_lea.sflag [#allocation19], %s3844_s17  ;;  %s441_s18 = sand.u32 (!%p2961_p5), 1, %s2790_s22  }
  0x6c   : > { %2299 = dma.hbm_to_vmem [thread:$0]  (!%p2294_p8), %s429_s5, 128, %s431_s20, %s419_s9  }
  0x6d   : > { %s1918_s29 = sshll.u32 (!%p2961_p5), %s441_s18, 6  ;;  %s442_s16 = scalar_lea.sflag (!%p2961_p5), [#allocation13], %s441_s18 }
  0x6e   : > { %s3121_s1 = scalar_lea.vmem (!%p2961_p5), [#allocation12], %s1918_s29 }
  0x6f   : > { %2745 = dma.done.wait (%p3024_p2), %s442_s16, 1024  }
  0x70   : > { %2747 = vsyncadd (%p3024_p2), %s442_s16, 4294966272  ;;  %s3846_s27 = sld [smem:[#allocation39_spill]] }
  0x76   : > { %s451_s0 = sand.u32 1, %s3846_s27   ;;  %p3847_p1 = scmp.eq.s32.totalorder %s3846_s27, 0 }
  0x77   : > { %s452_s10 = scalar_lea.sflag [#allocation16], %s451_s0 }
  0x78   : > { %2749 = dma.done.wait (%p3847_p1), %s452_s10, 2048   ;;  %p3848_p5 = pmov %p3847_p1 }
  0x79   : > { %s463_s14 = sand.u32 1, %s2778_s3  }
  0x7a   : > { %2751 = vsyncadd (%p3848_p5), %s452_s10, 4294965248  ;;  %s1920_s24 = sshll.u32 %s463_s14, 7 }
  0x7b   : > { %s3133_s6 = scalar_lea.vmem [#allocation17], %s1920_s24 }
  0x7c   : > { %2753 = dma.done.wait (%p2954_p4), %s452_s10, 2048  }
  0x7d   : > { %2755 = vsyncadd (%p2954_p4), %s452_s10, 4294965248  ;;  %s3139_s15 = sshll.u32 %s463_s14, 3  ;;  %s472_s28 = scalar_lea.sflag [#allocation19], %s451_s0 }
  0x7e   : > { %s475_s30 = scalar_lea.vmem [#allocation18], %s3139_s15 }
  0x7f   : > { %2757 = dma.done.wait (%p2954_p4), %s472_s28, 128  }
  0x80   : > { %2759 = vsyncadd (%p2954_p4), %s472_s28, 4294967168  ;;  %p3850_p9 = pmov %p3847_p1 }
  0x81   : > { %p3851_p2 = pmov %p3847_p1 }
  0x82   : > { %2761 = dma.done.wait (%p3850_p9), [#allocation19], 2048  }
  0x83   : > { %2763 = vsyncadd (%p3851_p2), [#allocation19], 4294965248  ;;  %p3852_p3 = pmov %p3847_p1 }
  0x84   : > { %p3853_p11 = pmov %p3847_p1 }
  0x85   : > { %2765 = dma.done.wait (%p3852_p3), [#allocation22], 16  }
  0x86   : > { %2767 = vsyncadd (%p3853_p11), [#allocation22], 4294967280  ;;  %s3854_s19 = sld [smem:[#allocation38_spill]] }
  0x8c   : > { %p541_p12 = scmp.lt.s32.totalorder %s3854_s19, 0  ;;  %s542_s4 = ssub.s32 0, %s3854_s19 }
  0x8d   : > { %s1924_s11 = smin.u32 %s3854_s19, %s542_s4  ;;  %s548_s2 = sadd.s32 1, %s3854_s19 }
  0x8e   : > { %s544_s12 = sand.u32 1, %s1924_s11   ;;  %p549_p4 = scmp.lt.s32.totalorder %s548_s2, 0 }
  0x8f   : > { %s545_s20 = ssub.s32 0, %s544_s12  ;;  %s550_s17 = ssub.s32 0, %s548_s2 }
  0x90   : > { %s3893_s20 = smov (!%p541_p12, %s545_s20), %s544_s12  ;;  %s1926_s9 = smin.u32 %s550_s17, %s548_s2 }
  0x91   : > { %p557_p13 = scmp.eq.s32.totalorder %s3854_s19, 0  ;;  %s1925_s13 = sshll.u32 %s3893_s20, 7 }
  0x92   : > { %s552_s18 = sand.u32 1, %s1926_s9   ;;  %v593_v0 = vld [vmem:[%s3133_s6 + $0x78] sm:$0xff] (%p557_p13)  ;;  %v592_v1 = vld [vmem:[%s3133_s6 + $0x70] sm:$0xff] (%p557_p13)  ;;  %v591_v2 = vld [vmem:[%s3133_s6 + $0x68] sm:$0xff] (%p557_p13) }
  0x93   : > { %s553_s29 = ssub.s32 0, %s552_s18  ;;  %561 = sbr.rel (!%p557_p13) target bundleno = 340 (0x154), region = 76  ;;  %594 = vmatpush.msra.mxu0 (%p557_p13), %v593_v0  ;;  %2126 = vmatpush.msra.mxu1 (%p557_p13), %v593_v0  ;;  %v590_v3 = vld [vmem:[%s3133_s6 + $0x60] sm:$0xff] (%p557_p13)  ;;  %v589_v4 = vld [vmem:[%s3133_s6 + $0x58] sm:$0xff] (%p557_p13)  ;;  %v588_v5 = vld [vmem:[%s3133_s6 + $0x50] sm:$0xff] (%p557_p13) }
  0x94   : > { %s3895_s29 = smov (!%p549_p4, %s553_s29), %s552_s18  ;;  %2127 = vmatpush.msra.mxu2 (%p557_p13), %v593_v0  ;;  %2128 = vmatpush.msra.mxu3 (%p557_p13), %v593_v0  ;;  %v587_v6 = vld [vmem:[%s3133_s6 + $0x48] sm:$0xff] (%p557_p13)  ;;  %v586_v7 = vld [vmem:[%s3133_s6 + $0x40] sm:$0xff] (%p557_p13)  ;;  %v585_v8 = vld [vmem:[%s3133_s6 + $0x38] sm:$0xff] (%p557_p13) }
  0x95   : > { %s1927_s16 = sshll.u32 %s3895_s29, 7  ;;  %595 = vmatpush.msra.mxu0 (%p557_p13), %v592_v1  ;;  %2129 = vmatpush.msra.mxu1 (%p557_p13), %v592_v1  ;;  %v584_v9 = vld [vmem:[%s3133_s6 + $0x30] sm:$0xff] (%p557_p13)  ;;  %v583_v10 = vld [vmem:[%s3133_s6 + $0x28] sm:$0xff] (%p557_p13)  ;;  %v582_v11 = vld [vmem:[%s3133_s6 + $0x20] sm:$0xff] (%p557_p13) }
  0x96   : > { %2130 = vmatpush.msra.mxu2 (%p557_p13), %v592_v1  ;;  %2131 = vmatpush.msra.mxu3 (%p557_p13), %v592_v1  ;;  %v581_v12 = vld [vmem:[%s3133_s6 + $0x18] sm:$0xff] (%p557_p13)  ;;  %v580_v13 = vld [vmem:[%s3133_s6 + $0x10] sm:$0xff] (%p557_p13)  ;;  %v579_v14 = vld [vmem:[%s3133_s6 + $0x8] sm:$0xff] (%p557_p13) }
  0x97   : > { %596 = vmatpush.msra.mxu0 (%p557_p13), %v591_v2  ;;  %2132 = vmatpush.msra.mxu1 (%p557_p13), %v591_v2  ;;  %v578_v15 = vld [vmem:[%s3133_s6] sm:$0xff] (%p557_p13)  ;;  %v563_v20 = vld [vmem:[#allocation15 + $0x8] sm:$0xff] (%p557_p13)  ;;  %v564_v24 = vld [vmem:[#allocation15 + $0x10] sm:$0xff] (%p557_p13) }
  0x98   : > { %2133 = vmatpush.msra.mxu2 %v591_v2  ;;  %2134 = vmatpush.msra.mxu3 %v591_v2  ;;  %v562_v16 = vld [vmem:[#allocation15] sm:$0xff]  ;;  %v567_v21 = vld [vmem:[#allocation15 + $0x28] sm:$0xff]  ;;  %v568_v25 = vld [vmem:[#allocation15 + $0x30] sm:$0xff] }
  0x99   : > { %597 = vmatpush.msra.mxu0 %v590_v3  ;;  %2135 = vmatpush.msra.mxu1 %v590_v3  ;;  %v566_v17 = vld [vmem:[#allocation15 + $0x20] sm:$0xff]  ;;  %v571_v22 = vld [vmem:[#allocation15 + $0x48] sm:$0xff]  ;;  %v572_v26 = vld [vmem:[#allocation15 + $0x50] sm:$0xff] }
  0x9a   : > { %2136 = vmatpush.msra.mxu2 %v590_v3  ;;  %2137 = vmatpush.msra.mxu3 %v590_v3  ;;  %v570_v18 = vld [vmem:[#allocation15 + $0x40] sm:$0xff]  ;;  %v575_v23 = vld [vmem:[#allocation15 + $0x68] sm:$0xff]  ;;  %v576_v27 = vld [vmem:[#allocation15 + $0x70] sm:$0xff] }
  0x9b   : > { %598 = vmatpush.msra.mxu0 %v589_v4  ;;  %2138 = vmatpush.msra.mxu1 %v589_v4  ;;  %v574_v19 = vld [vmem:[#allocation15 + $0x60] sm:$0xff]  ;;  %v565_v28 = vld [vmem:[#allocation15 + $0x18] sm:$0xff] }
  0x9c   : > { %2139 = vmatpush.msra.mxu2 %v589_v4  ;;  %2140 = vmatpush.msra.mxu3 %v589_v4  ;;  %v569_v29 = vld [vmem:[#allocation15 + $0x38] sm:$0xff] }
  0x9d   : > { %599 = vmatpush.msra.mxu0 %v588_v5  ;;  %2141 = vmatpush.msra.mxu1 %v588_v5  ;;  %v573_v30 = vld [vmem:[#allocation15 + $0x58] sm:$0xff] }
  0x9e   : > { %2142 = vmatpush.msra.mxu2 %v588_v5  ;;  %2143 = vmatpush.msra.mxu3 %v588_v5  ;;  %v577_v31 = vld [vmem:[#allocation15 + $0x78] sm:$0xff] }
  0x9f   : > { %600 = vmatpush.msra.mxu0 %v587_v6  ;;  %2144 = vmatpush.msra.mxu1 %v587_v6 }
  0xa0   : > { %2145 = vmatpush.msra.mxu2 %v587_v6  ;;  %2146 = vmatpush.msra.mxu3 %v587_v6 }
  0xa1   : > { %601 = vmatpush.msra.mxu0 %v586_v7  ;;  %2147 = vmatpush.msra.mxu1 %v586_v7 }
  0xa2   : > { %2148 = vmatpush.msra.mxu2 %v586_v7  ;;  %2149 = vmatpush.msra.mxu3 %v586_v7 }
  0xa3   : > { %602 = vmatpush.msra.mxu0 %v585_v8  ;;  %2150 = vmatpush.msra.mxu1 %v585_v8 }
  0xa4   : > { %2151 = vmatpush.msra.mxu2 %v585_v8  ;;  %2152 = vmatpush.msra.mxu3 %v585_v8 }
  0xa5   : > { %603 = vmatpush.msra.mxu0 %v584_v9  ;;  %2153 = vmatpush.msra.mxu1 %v584_v9 }
  0xa6   : > { %2154 = vmatpush.msra.mxu2 %v584_v9  ;;  %2155 = vmatpush.msra.mxu3 %v584_v9 }
  0xa7   : > { %604 = vmatpush.msra.mxu0 %v583_v10  ;;  %2156 = vmatpush.msra.mxu1 %v583_v10 }
  0xa8   : > { %2157 = vmatpush.msra.mxu2 %v583_v10  ;;  %2158 = vmatpush.msra.mxu3 %v583_v10 }
  0xa9   : > { %605 = vmatpush.msra.mxu0 %v582_v11  ;;  %2159 = vmatpush.msra.mxu1 %v582_v11 }
  0xaa   : > { %2160 = vmatpush.msra.mxu2 %v582_v11  ;;  %2161 = vmatpush.msra.mxu3 %v582_v11 }
  0xab   : > { %606 = vmatpush.msra.mxu0 %v581_v12  ;;  %2162 = vmatpush.msra.mxu1 %v581_v12 }
  0xac   : > { %2163 = vmatpush.msra.mxu2 %v581_v12  ;;  %2164 = vmatpush.msra.mxu3 %v581_v12 }
  0xad   : > { %607 = vmatpush.msra.mxu0 %v580_v13  ;;  %2165 = vmatpush.msra.mxu1 %v580_v13 }
  0xae   : > { %2166 = vmatpush.msra.mxu2 %v580_v13  ;;  %2167 = vmatpush.msra.mxu3 %v580_v13 }
  0xaf   : > { %608 = vmatpush.msra.mxu0 %v579_v14  ;;  %2168 = vmatpush.msra.mxu1 %v579_v14 }
  0xb0   : > { %2169 = vmatpush.msra.mxu2 %v579_v14  ;;  %2170 = vmatpush.msra.mxu3 %v579_v14 }
  0xb1   : > { %609 = vmatpush.msra.mxu0 %v578_v15  ;;  %2171 = vmatpush.msra.mxu1 %v578_v15 }
  0xb2   : > { %2172 = vmatpush.msra.mxu2 %v578_v15  ;;  %2173 = vmatpush.msra.mxu3 %v578_v15 }
  0xb3   : > { %610 = vmatmul.f32.vlgmr.msra.gmra.mxu0 %v562_v16  ;;  %622 = vmatmul.f32.vlgmr.msra.gmra.mxu1 %v566_v17 }
  0xb4   : > { %634 = vmatmul.f32.vlgmr.msra.gmra.mxu2 %v570_v18  ;;  %646 = vmatmul.f32.vlgmr.msra.gmra.mxu3 %v574_v19 }
  0xbb   : > { %613 = vmatmul.f32.gmra.mxu0 %v563_v20  ;;  %625 = vmatmul.f32.gmra.mxu1 %v567_v21 }
  0xbc   : > { %637 = vmatmul.f32.gmra.mxu2 %v571_v22  ;;  %649 = vmatmul.f32.gmra.mxu3 %v575_v23 }
  0xc3   : > { %616 = vmatmul.f32.gmra.mxu0 %v564_v24  ;;  %628 = vmatmul.f32.gmra.mxu1 %v568_v25 }
  0xc4   : > { %640 = vmatmul.f32.gmra.mxu2 %v572_v26  ;;  %652 = vmatmul.f32.gmra.mxu3 %v576_v27 }
  0xcb   : > { %619 = vmatmul.f32.gmra.mxu0 %v565_v28  ;;  %631 = vmatmul.f32.gmra.mxu1 %v569_v29 }
  0xcc   : > { %643 = vmatmul.f32.gmra.mxu2 %v573_v30  ;;  %655 = vmatmul.f32.gmra.mxu3 %v577_v31 }
 0x130   : > { %v611_v32 = vpop.f32.mrf.mxu0  ;;  %v623_v33 = vpop.f32.mrf.mxu1 }
 0x137   : > { %v635_v34 = vpop.f32.mrf.mxu2  ;;  %v647_v35 = vpop.f32.mrf.mxu3 }
 0x138   : > { %v614_v36 = vpop.f32.mrf.mxu0  ;;  %v626_v37 = vpop.f32.mrf.mxu1 }
 0x139   : > { %v2035_v38 = vpack.c.bf16 %v614_v36, %v611_v32  ;;  %v2045_v39 = vpack.c.bf16 %v626_v37, %v623_v33 }
 0x13b   : > { %2036 = vst [vmem:[#allocation3 + $0x30] sm:$0xff] %v2035_v38  }
 0x13c   : > { %2113 = vst [vmem:[#allocation3 + $0x18] sm:$0xff] %v2045_v39  }
 0x13f   : > { %v638_v40 = vpop.f32.mrf.mxu2  ;;  %v650_v41 = vpop.f32.mrf.mxu3 }
 0x140   : > { %v2055_v42 = vpack.c.bf16 %v638_v40, %v635_v34  ;;  %v2065_v43 = vpack.c.bf16 %v650_v41, %v647_v35  ;;  %v617_v44 = vpop.f32.mrf.mxu0  ;;  %v629_v45 = vpop.f32.mrf.mxu1 }
 0x142   : > { %2115 = vst [vmem:[#allocation3 + $0x8] sm:$0xff] %v2055_v42  }
 0x143   : > { %2117 = vst [vmem:[#allocation3 + $0x28] sm:$0xff] %v2065_v43  }
 0x147   : > { %v641_v46 = vpop.f32.mrf.mxu2  ;;  %v653_v47 = vpop.f32.mrf.mxu3 }
 0x148   : > { %v620_v48 = vpop.f32.mrf.mxu0  ;;  %v632_v49 = vpop.f32.mrf.mxu1 }
 0x149   : > { %v2040_v50 = vpack.c.bf16 %v620_v48, %v617_v44  ;;  %v2050_v51 = vpack.c.bf16 %v632_v49, %v629_v45 }
 0x14b   : > { %2112 = vst [vmem:[#allocation3] sm:$0xff] %v2040_v50  }
 0x14c   : > { %2114 = vst [vmem:[#allocation3 + $0x10] sm:$0xff] %v2050_v51  }
 0x14f   : > { %v644_v52 = vpop.f32.mrf.mxu2  ;;  %v656_v53 = vpop.f32.mrf.mxu3 }
 0x150   : > { %v2060_v54 = vpack.c.bf16 %v644_v52, %v641_v46  ;;  %v2070_v55 = vpack.c.bf16 %v656_v53, %v653_v47 }
 0x152   : > { %2116 = vst [vmem:[#allocation3 + $0x20] sm:$0xff] %v2060_v54  }
 0x153   : > { %2118 = vst [vmem:[#allocation3 + $0x38] sm:$0xff] %v2070_v55  }
 0x154 PF: > { %s3855_s27 = sld [smem:[#allocation38_spill]] }
 0x15a   : > { %p695_p0 = scmp.gt.s32.totalorder %s3855_s27, 0 }
 0x15b   : > { %v733_v56 = vld [vmem:[%s3133_s6 + $0x78] sm:$0xff] (%p695_p0)  ;;  %v732_v57 = vld [vmem:[%s3133_s6 + $0x70] sm:$0xff] (%p695_p0)  ;;  %v731_v58 = vld [vmem:[%s3133_s6 + $0x68] sm:$0xff] (%p695_p0)  ;;  %s3202_s0 = scalar_lea.vmem (%p695_p0), [#allocation2], %s1925_s13 }
 0x15c   : > { %699 = sbr.rel (!%p695_p0) target bundleno = 541 (0x21d), region = 80  ;;  %734 = vmatpush.msra.mxu0 (%p695_p0), %v733_v56  ;;  %2174 = vmatpush.msra.mxu1 (%p695_p0), %v733_v56  ;;  %v730_v59 = vld [vmem:[%s3133_s6 + $0x60] sm:$0xff] (%p695_p0)  ;;  %v729_v60 = vld [vmem:[%s3133_s6 + $0x58] sm:$0xff] (%p695_p0)  ;;  %v728_v61 = vld [vmem:[%s3133_s6 + $0x50] sm:$0xff] (%p695_p0) }
 0x15d   : > { %2175 = vmatpush.msra.mxu2 (%p695_p0), %v733_v56  ;;  %2176 = vmatpush.msra.mxu3 (%p695_p0), %v733_v56  ;;  %v727_v62 = vld [vmem:[%s3133_s6 + $0x48] sm:$0xff] (%p695_p0)  ;;  %v726_v63 = vld [vmem:[%s3133_s6 + $0x40] sm:$0xff] (%p695_p0)  ;;  %v725_v0 = vld [vmem:[%s3133_s6 + $0x38] sm:$0xff] (%p695_p0) }
 0x15e   : > { %735 = vmatpush.msra.mxu0 (%p695_p0), %v732_v57  ;;  %2177 = vmatpush.msra.mxu1 (%p695_p0), %v732_v57  ;;  %v724_v1 = vld [vmem:[%s3133_s6 + $0x30] sm:$0xff] (%p695_p0)  ;;  %v723_v2 = vld [vmem:[%s3133_s6 + $0x28] sm:$0xff] (%p695_p0)  ;;  %v722_v3 = vld [vmem:[%s3133_s6 + $0x20] sm:$0xff] (%p695_p0) }
 0x15f   : > { %2178 = vmatpush.msra.mxu2 (%p695_p0), %v732_v57  ;;  %2179 = vmatpush.msra.mxu3 (%p695_p0), %v732_v57  ;;  %v721_v4 = vld [vmem:[%s3133_s6 + $0x18] sm:$0xff] (%p695_p0)  ;;  %v720_v5 = vld [vmem:[%s3133_s6 + $0x10] sm:$0xff] (%p695_p0)  ;;  %v719_v6 = vld [vmem:[%s3133_s6 + $0x8] sm:$0xff] (%p695_p0) }
 0x160   : > { %736 = vmatpush.msra.mxu0 (%p695_p0), %v731_v58  ;;  %2180 = vmatpush.msra.mxu1 (%p695_p0), %v731_v58  ;;  %v718_v7 = vld [vmem:[%s3133_s6] sm:$0xff] (%p695_p0)  ;;  %v702_v8 = vld [vmem:[%s3202_s0] sm:$0xff] (%p695_p0)  ;;  %v703_v12 = vld [vmem:[%s3202_s0 + $0x8] sm:$0xff] (%p695_p0) }
 0x161   : > { %2181 = vmatpush.msra.mxu2 %v731_v58  ;;  %2182 = vmatpush.msra.mxu3 %v731_v58  ;;  %v706_v9 = vld [vmem:[%s3202_s0 + $0x20] sm:$0xff]  ;;  %v707_v13 = vld [vmem:[%s3202_s0 + $0x28] sm:$0xff]  ;;  %v704_v16 = vld [vmem:[%s3202_s0 + $0x10] sm:$0xff] }
 0x162   : > { %737 = vmatpush.msra.mxu0 %v730_v59  ;;  %2183 = vmatpush.msra.mxu1 %v730_v59  ;;  %v710_v10 = vld [vmem:[%s3202_s0 + $0x40] sm:$0xff]  ;;  %v711_v14 = vld [vmem:[%s3202_s0 + $0x48] sm:$0xff]  ;;  %v708_v17 = vld [vmem:[%s3202_s0 + $0x30] sm:$0xff] }
 0x163   : > { %2184 = vmatpush.msra.mxu2 %v730_v59  ;;  %2185 = vmatpush.msra.mxu3 %v730_v59  ;;  %v714_v11 = vld [vmem:[%s3202_s0 + $0x60] sm:$0xff]  ;;  %v715_v15 = vld [vmem:[%s3202_s0 + $0x68] sm:$0xff]  ;;  %v712_v18 = vld [vmem:[%s3202_s0 + $0x50] sm:$0xff] }
 0x164   : > { %738 = vmatpush.msra.mxu0 %v729_v60  ;;  %2186 = vmatpush.msra.mxu1 %v729_v60  ;;  %v716_v19 = vld [vmem:[%s3202_s0 + $0x70] sm:$0xff]  ;;  %v705_v20 = vld [vmem:[%s3202_s0 + $0x18] sm:$0xff] }
 0x165   : > { %2187 = vmatpush.msra.mxu2 %v729_v60  ;;  %2188 = vmatpush.msra.mxu3 %v729_v60  ;;  %v709_v21 = vld [vmem:[%s3202_s0 + $0x38] sm:$0xff] }
 0x166   : > { %739 = vmatpush.msra.mxu0 %v728_v61  ;;  %2189 = vmatpush.msra.mxu1 %v728_v61  ;;  %v713_v22 = vld [vmem:[%s3202_s0 + $0x58] sm:$0xff] }
 0x167   : > { %2190 = vmatpush.msra.mxu2 %v728_v61  ;;  %2191 = vmatpush.msra.mxu3 %v728_v61  ;;  %v717_v23 = vld [vmem:[%s3202_s0 + $0x78] sm:$0xff] }
 0x168   : > { %740 = vmatpush.msra.mxu0 %v727_v62  ;;  %2192 = vmatpush.msra.mxu1 %v727_v62 }
 0x169   : > { %2193 = vmatpush.msra.mxu2 %v727_v62  ;;  %2194 = vmatpush.msra.mxu3 %v727_v62 }
 0x16a   : > { %741 = vmatpush.msra.mxu0 %v726_v63  ;;  %2195 = vmatpush.msra.mxu1 %v726_v63 }
 0x16b   : > { %2196 = vmatpush.msra.mxu2 %v726_v63  ;;  %2197 = vmatpush.msra.mxu3 %v726_v63 }
 0x16c   : > { %742 = vmatpush.msra.mxu0 %v725_v0  ;;  %2198 = vmatpush.msra.mxu1 %v725_v0 }
 0x16d   : > { %2199 = vmatpush.msra.mxu2 %v725_v0  ;;  %2200 = vmatpush.msra.mxu3 %v725_v0 }
 0x16e   : > { %743 = vmatpush.msra.mxu0 %v724_v1  ;;  %2201 = vmatpush.msra.mxu1 %v724_v1 }
 0x16f   : > { %2202 = vmatpush.msra.mxu2 %v724_v1  ;;  %2203 = vmatpush.msra.mxu3 %v724_v1 }
 0x170   : > { %744 = vmatpush.msra.mxu0 %v723_v2  ;;  %2204 = vmatpush.msra.mxu1 %v723_v2 }
 0x171   : > { %2205 = vmatpush.msra.mxu2 %v723_v2  ;;  %2206 = vmatpush.msra.mxu3 %v723_v2 }
 0x172   : > { %745 = vmatpush.msra.mxu0 %v722_v3  ;;  %2207 = vmatpush.msra.mxu1 %v722_v3 }
 0x173   : > { %2208 = vmatpush.msra.mxu2 %v722_v3  ;;  %2209 = vmatpush.msra.mxu3 %v722_v3 }
 0x174   : > { %746 = vmatpush.msra.mxu0 %v721_v4  ;;  %2210 = vmatpush.msra.mxu1 %v721_v4 }
 0x175   : > { %2211 = vmatpush.msra.mxu2 %v721_v4  ;;  %2212 = vmatpush.msra.mxu3 %v721_v4 }
 0x176   : > { %747 = vmatpush.msra.mxu0 %v720_v5  ;;  %2213 = vmatpush.msra.mxu1 %v720_v5 }
 0x177   : > { %2214 = vmatpush.msra.mxu2 %v720_v5  ;;  %2215 = vmatpush.msra.mxu3 %v720_v5 }
 0x178   : > { %748 = vmatpush.msra.mxu0 %v719_v6  ;;  %2216 = vmatpush.msra.mxu1 %v719_v6 }
 0x179   : > { %2217 = vmatpush.msra.mxu2 %v719_v6  ;;  %2218 = vmatpush.msra.mxu3 %v719_v6 }
 0x17a   : > { %749 = vmatpush.msra.mxu0 %v718_v7  ;;  %2219 = vmatpush.msra.mxu1 %v718_v7 }
 0x17b   : > { %2220 = vmatpush.msra.mxu2 %v718_v7  ;;  %2221 = vmatpush.msra.mxu3 %v718_v7 }
 0x17c   : > { %750 = vmatmul.f32.vlgmr.msra.gmra.mxu0 %v702_v8  ;;  %762 = vmatmul.f32.vlgmr.msra.gmra.mxu1 %v706_v9 }
 0x17d   : > { %774 = vmatmul.f32.vlgmr.msra.gmra.mxu2 %v710_v10  ;;  %786 = vmatmul.f32.vlgmr.msra.gmra.mxu3 %v714_v11 }
 0x184   : > { %753 = vmatmul.f32.gmra.mxu0 %v703_v12  ;;  %765 = vmatmul.f32.gmra.mxu1 %v707_v13 }
 0x185   : > { %777 = vmatmul.f32.gmra.mxu2 %v711_v14  ;;  %789 = vmatmul.f32.gmra.mxu3 %v715_v15 }
 0x18c   : > { %756 = vmatmul.f32.gmra.mxu0 %v704_v16  ;;  %768 = vmatmul.f32.gmra.mxu1 %v708_v17 }
 0x18d   : > { %780 = vmatmul.f32.gmra.mxu2 %v712_v18  ;;  %792 = vmatmul.f32.gmra.mxu3 %v716_v19 }
 0x194   : > { %759 = vmatmul.f32.gmra.mxu0 %v705_v20  ;;  %771 = vmatmul.f32.gmra.mxu1 %v709_v21 }
 0x195   : > { %783 = vmatmul.f32.gmra.mxu2 %v713_v22  ;;  %795 = vmatmul.f32.gmra.mxu3 %v717_v23 }
 0x1f9   : > { %v751_v24 = vpop.f32.mrf.mxu0  ;;  %v763_v25 = vpop.f32.mrf.mxu1 }
 0x200   : > { %v775_v26 = vpop.f32.mrf.mxu2  ;;  %v787_v27 = vpop.f32.mrf.mxu3 }
 0x201   : > { %v754_v28 = vpop.f32.mrf.mxu0  ;;  %v766_v29 = vpop.f32.mrf.mxu1 }
 0x202   : > { %v2075_v30 = vpack.c.bf16 %v754_v28, %v751_v24  ;;  %v2085_v31 = vpack.c.bf16 %v766_v29, %v763_v25 }
 0x204   : > { %2076 = vst [vmem:[#allocation3 + $0x30] sm:$0xff] %v2075_v30  }
 0x205   : > { %2120 = vst [vmem:[#allocation3 + $0x18] sm:$0xff] %v2085_v31  }
 0x208   : > { %v778_v32 = vpop.f32.mrf.mxu2  ;;  %v790_v33 = vpop.f32.mrf.mxu3 }
 0x209   : > { %v2095_v34 = vpack.c.bf16 %v778_v32, %v775_v26  ;;  %v2105_v35 = vpack.c.bf16 %v790_v33, %v787_v27  ;;  %v757_v36 = vpop.f32.mrf.mxu0  ;;  %v769_v37 = vpop.f32.mrf.mxu1 }
 0x20b   : > { %2122 = vst [vmem:[#allocation3 + $0x8] sm:$0xff] %v2095_v34  }
 0x20c   : > { %2124 = vst [vmem:[#allocation3 + $0x28] sm:$0xff] %v2105_v35  }
 0x210   : > { %v781_v38 = vpop.f32.mrf.mxu2  ;;  %v793_v39 = vpop.f32.mrf.mxu3 }
 0x211   : > { %v760_v40 = vpop.f32.mrf.mxu0  ;;  %v772_v41 = vpop.f32.mrf.mxu1 }
 0x212   : > { %v2080_v42 = vpack.c.bf16 %v760_v40, %v757_v36  ;;  %v2090_v43 = vpack.c.bf16 %v772_v41, %v769_v37 }
 0x214   : > { %2119 = vst [vmem:[#allocation3] sm:$0xff] %v2080_v42  }
 0x215   : > { %2121 = vst [vmem:[#allocation3 + $0x10] sm:$0xff] %v2090_v43  }
 0x218   : > { %v784_v44 = vpop.f32.mrf.mxu2  ;;  %v796_v45 = vpop.f32.mrf.mxu3 }
 0x219   : > { %v2100_v46 = vpack.c.bf16 %v784_v44, %v781_v38  ;;  %v2110_v47 = vpack.c.bf16 %v796_v45, %v793_v39 }
 0x21b   : > { %2123 = vst [vmem:[#allocation3 + $0x20] sm:$0xff] %v2100_v46  }
 0x21c   : > { %2125 = vst [vmem:[#allocation3 + $0x38] sm:$0xff] %v2110_v47  }
 0x21d PF: > { %s3856_s10 = sld [smem:[#allocation38_spill]]  ;;  %v2820_v48 = vmov 0.0  }
 0x21e   : > { %839 = vst [vmem:[#allocation4] sm:$0xff] %v2820_v48 }
 0x21f   : > { %840 = vst [vmem:[#allocation4 + $0x18] sm:$0xff] %v2820_v48 }
 0x220   : > { %841 = vst [vmem:[#allocation4 + $0x50] sm:$0xff] %v2820_v48 }
 0x221   : > { %842 = vst [vmem:[#allocation4 + $0x60] sm:$0xff] %v2820_v48 }
 0x222   : > { %843 = vst [vmem:[#allocation4 + $0x68] sm:$0xff] %v2820_v48 }
 0x223   : > { %s857_s5 = sld [smem:[#allocation8 + %s3856_s10]]  ;;  %844 = vst [vmem:[#allocation4 + $0x20] sm:$0xff] %v2820_v48 }
 0x224   : > { %845 = vst [vmem:[#allocation4 + $0x70] sm:$0xff] %v2820_v48 }
 0x225   : > { %846 = vst [vmem:[#allocation4 + $0x10] sm:$0xff] %v2820_v48 }
 0x226   : > { %847 = vst [vmem:[#allocation4 + $0x28] sm:$0xff] %v2820_v48 }
 0x227   : > { %848 = vst [vmem:[#allocation4 + $0x40] sm:$0xff] %v2820_v48 }
 0x228   : > { %849 = vst [vmem:[#allocation4 + $0x38] sm:$0xff] %v2820_v48 }
 0x229   : > { %850 = vst [vmem:[#allocation4 + $0x8] sm:$0xff] %v2820_v48  ;;  %p1930_p6 = scmp.le.s32.totalorder %s857_s5, 0 }
 0x22a   : > { %851 = vst [vmem:[#allocation4 + $0x58] sm:$0xff] %v2820_v48 }
 0x22b   : > { %852 = vst [vmem:[#allocation4 + $0x48] sm:$0xff] %v2820_v48  ;;  %861 = sbr.rel (%p1930_p6) target bundleno = 753 (0x2f1), region = 88 }
 0x22c   : > { %853 = vst [vmem:[#allocation4 + $0x78] sm:$0xff] %v2820_v48 }
 0x22d   : > { %854 = vst [vmem:[#allocation4 + $0x30] sm:$0xff] %v2820_v48 }
 0x230   : > { %v2029_v49 = vld [vmem:[#allocation3 + $0x38] sm:$0xff]  ;;  %v2028_v50 = vld [vmem:[#allocation3 + $0x28] sm:$0xff]  ;;  %v2027_v51 = vld [vmem:[#allocation3 + $0x20] sm:$0xff] }
 0x231   : > { %1010 = vmatpush.bf16.msra.mxu0 %v2029_v49  ;;  %2222 = vmatpush.bf16.msra.mxu1 %v2029_v49  ;;  %v2026_v52 = vld [vmem:[#allocation3 + $0x8] sm:$0xff]  ;;  %v2025_v53 = vld [vmem:[#allocation3 + $0x10] sm:$0xff]  ;;  %v2024_v54 = vld [vmem:[#allocation3 + $0x18] sm:$0xff] }
 0x232   : > { %2223 = vmatpush.bf16.msra.mxu2 %v2029_v49  ;;  %2224 = vmatpush.bf16.msra.mxu3 %v2029_v49  ;;  %v2023_v55 = vld [vmem:[#allocation3] sm:$0xff]  ;;  %v2022_v56 = vld [vmem:[#allocation3 + $0x30] sm:$0xff]  ;;  %v2014_v57 = vld [vmem:[%s3121_s1] sm:$0xff] }
 0x233   : > { %v2016_v58 = vld [vmem:[%s3121_s1 + $0x10] sm:$0xff]  ;;  %v2018_v59 = vld [vmem:[%s3121_s1 + $0x20] sm:$0xff]  ;;  %v2015_v61 = vld [vmem:[%s3121_s1 + $0x8] sm:$0xff] }
 0x234   : > { %v2020_v60 = vld [vmem:[%s3121_s1 + $0x30] sm:$0xff]  ;;  %v2017_v62 = vld [vmem:[%s3121_s1 + $0x18] sm:$0xff]  ;;  %v2019_v63 = vld [vmem:[%s3121_s1 + $0x28] sm:$0xff] }
 0x235   : > { %1011 = vmatpush.bf16.msra.mxu0 %v2028_v50  ;;  %2225 = vmatpush.bf16.msra.mxu1 %v2028_v50  ;;  %v2021_v0 = vld [vmem:[%s3121_s1 + $0x38] sm:$0xff]  ;;  %v866_v2 = vld [vmem:[#allocation4 + $0x68] sm:$0xff]  ;;  %v874_v8 = vld [vmem:[#allocation4 + $0x58] sm:$0xff] }
 0x236   : > { %2226 = vmatpush.bf16.msra.mxu2 %v2028_v50  ;;  %2227 = vmatpush.bf16.msra.mxu3 %v2028_v50  ;;  %v862_v1 = vld [vmem:[#allocation4] sm:$0xff]  ;;  %v870_v7 = vld [vmem:[#allocation4 + $0x28] sm:$0xff]  ;;  %v863_v9 = vld [vmem:[#allocation4 + $0x18] sm:$0xff] }
 0x237   : > { %v867_v10 = vld [vmem:[#allocation4 + $0x20] sm:$0xff]  ;;  %v875_v20 = vld [vmem:[#allocation4 + $0x48] sm:$0xff]  ;;  %v864_v21 = vld [vmem:[#allocation4 + $0x50] sm:$0xff] }
 0x238   : > { %v871_v19 = vld [vmem:[#allocation4 + $0x40] sm:$0xff]  ;;  %v868_v22 = vld [vmem:[#allocation4 + $0x70] sm:$0xff]  ;;  %v872_v31 = vld [vmem:[#allocation4 + $0x38] sm:$0xff] }
 0x239   : > { %1012 = vmatpush.bf16.msra.mxu0 %v2027_v51  ;;  %2228 = vmatpush.bf16.msra.mxu1 %v2027_v51  ;;  %v876_v32 = vld [vmem:[#allocation4 + $0x78] sm:$0xff]  ;;  %v865_v33 = vld [vmem:[#allocation4 + $0x60] sm:$0xff]  ;;  %v869_v34 = vld [vmem:[#allocation4 + $0x10] sm:$0xff] }
 0x23a   : > { %2229 = vmatpush.bf16.msra.mxu2 %v2027_v51  ;;  %2230 = vmatpush.bf16.msra.mxu3 %v2027_v51  ;;  %v873_v43 = vld [vmem:[#allocation4 + $0x8] sm:$0xff]  ;;  %v877_v44 = vld [vmem:[#allocation4 + $0x30] sm:$0xff] }
 0x23d   : > { %1013 = vmatpush.bf16.msra.mxu0 %v2026_v52  ;;  %2231 = vmatpush.bf16.msra.mxu1 %v2026_v52 }
 0x23e   : > { %2232 = vmatpush.bf16.msra.mxu2 %v2026_v52  ;;  %2233 = vmatpush.bf16.msra.mxu3 %v2026_v52 }
 0x241   : > { %1014 = vmatpush.bf16.msra.mxu0 %v2025_v53  ;;  %2234 = vmatpush.bf16.msra.mxu1 %v2025_v53 }
 0x242   : > { %2235 = vmatpush.bf16.msra.mxu2 %v2025_v53  ;;  %2236 = vmatpush.bf16.msra.mxu3 %v2025_v53 }
 0x245   : > { %1015 = vmatpush.bf16.msra.mxu0 %v2024_v54  ;;  %2237 = vmatpush.bf16.msra.mxu1 %v2024_v54 }
 0x246   : > { %2238 = vmatpush.bf16.msra.mxu2 %v2024_v54  ;;  %2239 = vmatpush.bf16.msra.mxu3 %v2024_v54 }
 0x249   : > { %1016 = vmatpush.bf16.msra.mxu0 %v2023_v55  ;;  %2240 = vmatpush.bf16.msra.mxu1 %v2023_v55 }
 0x24a   : > { %2241 = vmatpush.bf16.msra.mxu2 %v2023_v55  ;;  %2242 = vmatpush.bf16.msra.mxu3 %v2023_v55 }
 0x24d   : > { %1017 = vmatpush.bf16.msra.mxu0 %v2022_v56  ;;  %2243 = vmatpush.bf16.msra.mxu1 %v2022_v56 }
 0x24e   : > { %2244 = vmatpush.bf16.msra.mxu2 %v2022_v56  ;;  %2245 = vmatpush.bf16.msra.mxu3 %v2022_v56 }
 0x250   : > { %1018 = vmatmul.bf16.vlgmr.msra.gmra.mxu0 %v2014_v57  ;;  %1028 = vmatmul.bf16.vlgmr.msra.gmra.mxu1 %v2016_v58 }
 0x251   : > { %1038 = vmatmul.bf16.vlgmr.msra.gmra.mxu2 %v2018_v59  ;;  %1048 = vmatmul.bf16.vlgmr.msra.gmra.mxu3 %v2020_v60 }
 0x260   : > { %1023 = vmatmul.bf16.gmra.mxu0 %v2015_v61  ;;  %1033 = vmatmul.bf16.gmra.mxu1 %v2017_v62 }
 0x261   : > { %1043 = vmatmul.bf16.gmra.mxu2 %v2019_v63  ;;  %1053 = vmatmul.bf16.gmra.mxu3 %v2021_v0 }
 0x2cd   : > { %v1019_v3 = vpop.f32.mrf.mxu0  ;;  %v1029_v4 = vpop.f32.mrf.mxu1 }
 0x2ce   : > { %v1059_v5 = vadd.f32 %v1019_v3, %v862_v1  ;;  %v1063_v6 = vadd.f32 %v1029_v4, %v866_v2 }
 0x2d0   : > { %1075 = vst [vmem:[#allocation4] sm:$0xff] %v1059_v5 }
 0x2d1   : > { %1079 = vst [vmem:[#allocation4 + $0x68] sm:$0xff] %v1063_v6 }
 0x2d4   : > { %v1039_v11 = vpop.f32.mrf.mxu2  ;;  %v1049_v12 = vpop.f32.mrf.mxu3 }
 0x2d5   : > { %v1067_v13 = vadd.f32 %v1039_v11, %v870_v7  ;;  %v1071_v14 = vadd.f32 %v1049_v12, %v874_v8  ;;  %v1021_v15 = vpop.f32.mrf.mxu0  ;;  %v1031_v16 = vpop.f32.mrf.mxu1 }
 0x2d6   : > { %v1060_v17 = vadd.f32 %v1021_v15, %v863_v9  ;;  %v1064_v18 = vadd.f32 %v1031_v16, %v867_v10 }
 0x2d7   : > { %1083 = vst [vmem:[#allocation4 + $0x28] sm:$0xff] %v1067_v13 }
 0x2d8   : > { %1087 = vst [vmem:[#allocation4 + $0x58] sm:$0xff] %v1071_v14 }
 0x2d9   : > { %1076 = vst [vmem:[#allocation4 + $0x18] sm:$0xff] %v1060_v17 }
 0x2da   : > { %1080 = vst [vmem:[#allocation4 + $0x20] sm:$0xff] %v1064_v18 }
 0x2dc   : > { %v1041_v23 = vpop.f32.mrf.mxu2  ;;  %v1051_v24 = vpop.f32.mrf.mxu3 }
 0x2dd   : > { %v1068_v25 = vadd.f32 %v1041_v23, %v871_v19  ;;  %v1072_v26 = vadd.f32 %v1051_v24, %v875_v20  ;;  %v1024_v27 = vpop.f32.mrf.mxu0  ;;  %v1034_v28 = vpop.f32.mrf.mxu1 }
 0x2de   : > { %v1061_v29 = vadd.f32 %v1024_v27, %v864_v21  ;;  %v1065_v30 = vadd.f32 %v1034_v28, %v868_v22 }
 0x2df   : > { %1084 = vst [vmem:[#allocation4 + $0x40] sm:$0xff] %v1068_v25 }
 0x2e0   : > { %1088 = vst [vmem:[#allocation4 + $0x48] sm:$0xff] %v1072_v26 }
 0x2e1   : > { %1077 = vst [vmem:[#allocation4 + $0x50] sm:$0xff] %v1061_v29 }
 0x2e2   : > { %1081 = vst [vmem:[#allocation4 + $0x70] sm:$0xff] %v1065_v30 }
 0x2e4   : > { %v1044_v35 = vpop.f32.mrf.mxu2  ;;  %v1054_v36 = vpop.f32.mrf.mxu3 }
 0x2e5   : > { %v1069_v37 = vadd.f32 %v1044_v35, %v872_v31  ;;  %v1073_v38 = vadd.f32 %v1054_v36, %v876_v32  ;;  %v1026_v39 = vpop.f32.mrf.mxu0  ;;  %v1036_v40 = vpop.f32.mrf.mxu1 }
 0x2e6   : > { %v1062_v41 = vadd.f32 %v1026_v39, %v865_v33  ;;  %v1066_v42 = vadd.f32 %v1036_v40, %v869_v34 }
 0x2e7   : > { %1085 = vst [vmem:[#allocation4 + $0x38] sm:$0xff] %v1069_v37 }
 0x2e8   : > { %1089 = vst [vmem:[#allocation4 + $0x78] sm:$0xff] %v1073_v38 }
 0x2e9   : > { %1078 = vst [vmem:[#allocation4 + $0x60] sm:$0xff] %v1062_v41 }
 0x2ea   : > { %1082 = vst [vmem:[#allocation4 + $0x10] sm:$0xff] %v1066_v42 }
 0x2ec   : > { %v1046_v45 = vpop.f32.mrf.mxu2  ;;  %v1056_v46 = vpop.f32.mrf.mxu3 }
 0x2ed   : > { %v1070_v47 = vadd.f32 %v1046_v45, %v873_v43  ;;  %v1074_v48 = vadd.f32 %v1056_v46, %v877_v44 }
 0x2ef   : > { %1086 = vst [vmem:[#allocation4 + $0x8] sm:$0xff] %v1070_v47 }
 0x2f0   : > { %1090 = vst [vmem:[#allocation4 + $0x30] sm:$0xff] %v1074_v48 }
 0x2f1 PF: > { %v3231_v49 = vld [vmem:[%s475_s30] sm:$0xff]  ;;  %vm1128_vm0 = vcmask 1043459   ;;  %v1098_v51 = vld [vmem:[#allocation4 + $0x60] sm:$0xff]  ;;  %v1096_v52 = vld [vmem:[#allocation4 + $0x18] sm:$0xff]  ;;  %s3857_s1 = sld [smem:[#allocation38_spill]]  ;;  %s3531_s24 = scalar_lea.vmem [#allocation2], %s1927_s16 }
 0x2f2   : > { %v1129_v50 = vsel %vm1128_vm0, %v3231_v49, 0.0  ;;  %v1111_v53 = vperm.slane %v3231_v49, 0  ;;  %v1095_v54 = vld [vmem:[#allocation4] sm:$0xff]  ;;  %v1099_v58 = vld [vmem:[#allocation4 + $0x68] sm:$0xff]  ;;  %v1097_v59 = vld [vmem:[#allocation4 + $0x50] sm:$0xff]  ;;  %v3286_v38 = vperm.slane %v3231_v49, 3 }
 0x2f3   : > { %1130 = vadd.xlane.f32.xlu0 %v1129_v50  ;;  %v1100_v62 = vld [vmem:[#allocation4 + $0x20] sm:$0xff]  ;;  %v1102_v0 = vld [vmem:[#allocation4 + $0x10] sm:$0xff]  ;;  %v1103_v4 = vld [vmem:[#allocation4 + $0x28] sm:$0xff]  ;;  %s3414_s14 = scalar_select %p695_p0, 1, 0 }
 0x2f4   : > { %v3235_v55 = vadd.f32 %v1111_v53, %v1098_v51  ;;  %v3237_v56 = vadd.f32 %v1111_v53, %v1096_v52  ;;  %v3241_v57 = vadd.f32 %v1111_v53, %v1095_v54  ;;  %v3244_v60 = vadd.f32 %v1111_v53, %v1099_v58  ;;  %v1101_v1 = vld [vmem:[#allocation4 + $0x70] sm:$0xff]  ;;  %v1105_v6 = vld [vmem:[#allocation4 + $0x38] sm:$0xff]  ;;  %v1104_v7 = vld [vmem:[#allocation4 + $0x40] sm:$0xff] }
 0x2f5   : > { %v3246_v61 = vadd.f32 %v1111_v53, %v1097_v59  ;;  %v3250_v63 = vadd.f32 %v1111_v53, %v1100_v62  ;;  %v3253_v2 = vadd.f32 %v1111_v53, %v1102_v0  ;;  %v3255_v3 = vadd.f32 %v1111_v53, %v1101_v1  ;;  %v1108_v12 = vld [vmem:[#allocation4 + $0x48] sm:$0xff]  ;;  %v1107_v13 = vld [vmem:[#allocation4 + $0x58] sm:$0xff] }
 0x2f6   : > { %1153 = vadd.xlane.f32.xlu2 %v3235_v55  ;;  %1149 = vadd.xlane.f32.xlu1 %v3237_v56  ;;  %v3259_v5 = vadd.f32 %v1111_v53, %v1103_v4  ;;  %v3262_v8 = vadd.f32 %v1111_v53, %v1105_v6  ;;  %v3264_v9 = vadd.f32 %v1111_v53, %v1104_v7  ;;  %v1106_v10 = vld [vmem:[#allocation4 + $0x8] sm:$0xff]  ;;  %v1109_v16 = vld [vmem:[#allocation4 + $0x78] sm:$0xff] }
 0x2f7   : > { %v3268_v11 = vadd.f32 %v1111_v53, %v1106_v10  ;;  %v3271_v14 = vadd.f32 %v1111_v53, %v1108_v12  ;;  %v3273_v15 = vadd.f32 %v1111_v53, %v1107_v13  ;;  %v3277_v17 = vadd.f32 %v1111_v53, %v1109_v16  ;;  %v1110_v18 = vld [vmem:[#allocation4 + $0x30] sm:$0xff]  ;;  %p1604_p7 = scmp.eq.s32.totalorder %s3857_s1, 1 }
 0x2f8   : > { %v3280_v19 = vadd.f32 %v1111_v53, %v1110_v18  ;;  %s1611_s6 = sld [smem:[#allocation7]] (%p1604_p7) }
 0x2f9   : > { %s1997_s15 = sld [smem:[#allocation7 + $0x1]] (%p1604_p7) }
 0x2fa   : > { %s1998_s28 = sld [smem:[#allocation7 + $0x2]] (%p1604_p7) }
 0x2fb   : > { %1147 = vadd.xlane.f32.xlu0 %v3241_v57  ;;  %s1999_s30 = sld [smem:[#allocation7 + $0x3]] (%p1604_p7) }
 0x2fc   : > { %s2000_s19 = sld [smem:[#allocation7 + $0x4]] (%p1604_p7) }
 0x2fd   : > { %s2001_s4 = sld [smem:[#allocation7 + $0x5]] (%p1604_p7) }
 0x2fe   : > { %1155 = vadd.xlane.f32.xlu2 %v3244_v60  ;;  %1151 = vadd.xlane.f32.xlu1 %v3246_v61  ;;  %s2002_s11 = sld [smem:[#allocation7 + $0x6]] (%p1604_p7)  ;;  %s1612_s2 = scalar_lea.vmem (%p1604_p7), [#allocation2], %s1611_s6 }
 0x2ff   : > { %s2003_s12 = sld [smem:[#allocation7 + $0x7]] (%p1604_p7)  ;;  %s1616_s20 = scalar_lea.vmem (%p1604_p7), [#allocation2], %s1997_s15 }
 0x300   : > { %s1620_s17 = scalar_lea.vmem (%p1604_p7), [#allocation2], %s1998_s28  ;;  %s3868_s10 = sld [smem:[#allocation50_spill]] (%p1604_p7) }
 0x301   : > { %s1624_s9 = scalar_lea.vmem (%p1604_p7), [#allocation2], %s1999_s30 }
 0x302   : > { %s1628_s13 = scalar_lea.vmem (%p1604_p7), [#allocation2], %s2000_s19 }
 0x303   : > { %1157 = vadd.xlane.f32.xlu0 %v3250_v63  ;;  %s1632_s18 = scalar_lea.vmem (%p1604_p7), [#allocation2], %s2001_s4 }
 0x304   : > { %s1636_s29 = scalar_lea.vmem (%p1604_p7), [#allocation2], %s2002_s11 }
 0x305   : > { %s1640_s16 = scalar_lea.vmem (%p1604_p7), [#allocation2], %s2003_s12 }
 0x306   : > { %1161 = vadd.xlane.f32.xlu2 %v3253_v2  ;;  %1159 = vadd.xlane.f32.xlu1 %v3255_v3 }
 0x30b   : > { %1163 = vadd.xlane.f32.xlu0 %v3259_v5 }
 0x30e   : > { %1167 = vadd.xlane.f32.xlu2 %v3262_v8  ;;  %1165 = vadd.xlane.f32.xlu1 %v3264_v9 }
 0x313   : > { %1169 = vadd.xlane.f32.xlu0 %v3268_v11 }
 0x316   : > { %1173 = vadd.xlane.f32.xlu2 %v3271_v14  ;;  %1171 = vadd.xlane.f32.xlu1 %v3273_v15 }
 0x31b   : > { %1175 = vadd.xlane.f32.xlu0 %v3277_v17 }
 0x31e   : > { %1177 = vadd.xlane.f32.xlu1 %v3280_v19 }
 0x366   : > { %v1131_v20 = vpop.xlane.xlu0 %1130 }
 0x367   : > { %2395 = vrcp.f32 %v1131_v20  ;;  %v1143_v27 = vand.u32 2147483648, %v1131_v20  ;;  %v1141_v29 = vand.u32 2147483647, %v1131_v20  ;;  %vm1137_vm2 = vweird.f32 %v1131_v20 }
 0x369   : > { %v1154_v21 = vpop.xlane.xlu2 %1153  ;;  %v1150_v22 = vpop.xlane.xlu1 %1149  ;;  %v1144_v33 = vor.u32 1.1754944e-38, %v1143_v27  ;;  %vm1142_vm4 = vcmp.eq.f32.partialorder %v1141_v29, 8.507059e+37 }
 0x36d   : > { %v2396_v23 = vpop.eup %2395 }
 0x36e   : > { %v1133_v24 = vmul.f32 %v2396_v23, %v1131_v20  ;;  %v1148_v25 = vpop.xlane.xlu0 %1147  ;;  %vm1138_vm1 = vweird.f32 %v2396_v23 }
 0x36f   : > { %vm1139_vm3 = vmor %vm1137_vm2, %vm1138_vm1 }
 0x370   : > { %v1134_v26 = vsub.f32 1.0, %v1133_v24 }
 0x371   : > { %v1152_v30 = vpop.xlane.xlu1 %1151  ;;  %v1156_v31 = vpop.xlane.xlu2 %1155 }
 0x372   : > { %v1135_v28 = vmul.f32 %v2396_v23, %v1134_v26 }
 0x374   : > { %v1136_v32 = vadd.f32 %v2396_v23, %v1135_v28 }
 0x376   : > { %v1140_v34 = vsel %vm1139_vm3, %v2396_v23, %v1136_v32  ;;  %v1158_v35 = vpop.xlane.xlu0 %1157 }
 0x377   : > { %v1145_v36 = vsel %vm1142_vm4, %v1144_v33, %v1140_v34 }
 0x378   : > { %v3283_v37 = vperm.slane %v1145_v36, 3 }
 0x379   : > { %v1160_v42 = vpop.xlane.xlu1 %1159  ;;  %v1162_v50 = vpop.xlane.xlu2 %1161 }
 0x37a   : > { %v1181_v39 = vmul.f32 %v3283_v37, %v1150_v22  ;;  %v1180_v40 = vmul.f32 %v3283_v37, %v1148_v25  ;;  %v1182_v41 = vmul.f32 %v3283_v37, %v1152_v30  ;;  %v1183_v43 = vmul.f32 %v3283_v37, %v1154_v21 }
 0x37b   : > { %v1184_v46 = vmul.f32 %v3283_v37, %v1156_v31  ;;  %v1185_v48 = vmul.f32 %v3283_v37, %v1158_v35  ;;  %v1187_v0 = vmul.f32 %v3283_v37, %v1162_v50 }
 0x37c   : > { %v1197_v44 = vsub.f32 %v3237_v56, %v1181_v39  ;;  %v1196_v45 = vsub.f32 %v3241_v57, %v1180_v40  ;;  %v1198_v47 = vsub.f32 %v3246_v61, %v1182_v41  ;;  %v1199_v56 = vsub.f32 %v3235_v55, %v1183_v43 }
 0x37d   : > { %v1200_v57 = vsub.f32 %v3244_v60, %v1184_v46  ;;  %v1201_v61 = vsub.f32 %v3250_v63, %v1185_v48  ;;  %v1186_v55 = vmul.f32 %v3283_v37, %v1160_v42  ;;  %v1203_v10 = vsub.f32 %v3253_v2, %v1187_v0 }
 0x37e   : > { %v1164_v51 = vpop.xlane.xlu0 %1163  ;;  %v3298_v52 = vmul.f32 %v3286_v38, %v1197_v44  ;;  %v3301_v53 = vmul.f32 %v3286_v38, %v1196_v45  ;;  %v3304_v54 = vmul.f32 %v3286_v38, %v1198_v47  ;;  %v3321_v1 = vmul.f32 %v3286_v38, %v1199_v56 }
 0x37f   : > { %v3318_v60 = vmul.f32 %v3286_v38, %v1200_v57  ;;  %v1188_v4 = vmul.f32 %v3283_v37, %v1164_v51  ;;  %v3325_v63 = vmul.f32 %v3286_v38, %v1201_v61  ;;  %v1202_v12 = vsub.f32 %v3255_v3, %v1186_v55 }
 0x380   : > { %v1230_v58 = vmul.f32 %v3298_v52, %v3298_v52  ;;  %v1229_v59 = vmul.f32 %v3301_v53, %v3301_v53  ;;  %v1231_v62 = vmul.f32 %v3304_v54, %v3304_v54  ;;  %v1232_v18 = vmul.f32 %v3321_v1, %v3321_v1 }
 0x381   : > { %v1166_v6 = vpop.xlane.xlu1 %1165  ;;  %v1168_v7 = vpop.xlane.xlu2 %1167  ;;  %v1233_v16 = vmul.f32 %v3318_v60, %v3318_v60  ;;  %v1204_v20 = vsub.f32 %v3259_v5, %v1188_v4  ;;  %v1234_v21 = vmul.f32 %v3325_v63, %v3325_v63  ;;  %v3339_v3 = vmul.f32 %v3286_v38, %v1203_v10 }
 0x382   : > { %1247 = vadd.xlane.f32.xlu0 %v1230_v58  ;;  %1245 = vadd.xlane.f32.xlu2 %v1229_v59  ;;  %v1190_v22 = vmul.f32 %v3283_v37, %v1168_v7  ;;  %v1189_v2 = vmul.f32 %v3283_v37, %v1166_v6  ;;  %v3342_v23 = vmul.f32 %v3286_v38, %v1202_v12 }
 0x383   : > { %1249 = vadd.xlane.f32.xlu1 %v1231_v62  ;;  %v3346_v5 = vmul.f32 %v3286_v38, %v1204_v20  ;;  %v1236_v28 = vmul.f32 %v3339_v3, %v3339_v3 }
 0x384   : > { %v1206_v26 = vsub.f32 %v3262_v8, %v1190_v22  ;;  %v1205_v27 = vsub.f32 %v3264_v9, %v1189_v2  ;;  %v1235_v29 = vmul.f32 %v3342_v23, %v3342_v23 }
 0x385   : > { %v1237_v32 = vmul.f32 %v3346_v5, %v3346_v5 }
 0x386   : > { %v1170_v13 = vpop.xlane.xlu0 %1169  ;;  %v3360_v34 = vmul.f32 %v3286_v38, %v1206_v26  ;;  %v3363_v35 = vmul.f32 %v3286_v38, %v1205_v27  ;;  %v3424_v26 = vperm.slane %v3231_v49, 1  ;;  %v3427_v27 = vperm.slane %v3231_v49, 2 }
 0x387   : > { %v1191_v24 = vmul.f32 %v3283_v37, %v1170_v13 }
 0x388   : > { %v1239_v41 = vmul.f32 %v3360_v34, %v3360_v34  ;;  %v1238_v42 = vmul.f32 %v3363_v35, %v3363_v35 }
 0x389   : > { %v1172_v25 = vpop.xlane.xlu1 %1171  ;;  %v1207_v30 = vsub.f32 %v3268_v11, %v1191_v24  ;;  %v1174_v31 = vpop.xlane.xlu2 %1173 }
 0x38a   : > { %1253 = vadd.xlane.f32.xlu0 %v1233_v16  ;;  %1251 = vadd.xlane.f32.xlu2 %v1232_v18  ;;  %v1193_v8 = vmul.f32 %v3283_v37, %v1174_v31  ;;  %v1192_v9 = vmul.f32 %v3283_v37, %v1172_v25 }
 0x38b   : > { %1255 = vadd.xlane.f32.xlu1 %v1234_v21  ;;  %v3367_v36 = vmul.f32 %v3286_v38, %v1207_v30 }
 0x38c   : > { %v1209_v39 = vsub.f32 %v3271_v14, %v1193_v8  ;;  %v1208_v40 = vsub.f32 %v3273_v15, %v1192_v9 }
 0x38d   : > { %v1240_v45 = vmul.f32 %v3367_v36, %v3367_v36 }
 0x38e   : > { %v1176_v33 = vpop.xlane.xlu0 %1175  ;;  %v3380_v15 = vmul.f32 %v3286_v38, %v1209_v39  ;;  %v3383_v46 = vmul.f32 %v3286_v38, %v1208_v40 }
 0x38f   : > { %v1194_v11 = vmul.f32 %v3283_v37, %v1176_v33 }
 0x390   : > { %v1242_v48 = vmul.f32 %v3380_v15, %v3380_v15  ;;  %v1241_v50 = vmul.f32 %v3383_v46, %v3383_v46 }
 0x391   : > { %v1210_v43 = vsub.f32 %v3277_v17, %v1194_v11  ;;  %v1178_v44 = vpop.xlane.xlu1 %1177 }
 0x392   : > { %1259 = vadd.xlane.f32.xlu0 %v1236_v28  ;;  %1257 = vadd.xlane.f32.xlu2 %v1235_v29  ;;  %v1195_v14 = vmul.f32 %v3283_v37, %v1178_v44  ;;  %v1536_v29 = vstv %s3414_s14 }
 0x393   : > { %1261 = vadd.xlane.f32.xlu1 %v1237_v32  ;;  %v3386_v47 = vmul.f32 %v3286_v38, %v1210_v43  ;;  %vm3442_vm12 = vcmp.eq.s32.totalorder %v1536_v29, 1 }
 0x394   : > { %v1211_v17 = vsub.f32 %v3280_v19, %v1195_v14 }
 0x395   : > { %v1243_v51 = vmul.f32 %v3386_v47, %v3386_v47 }
 0x396   : > { %v3396_v56 = vmul.f32 %v3286_v38, %v1211_v17 }
 0x398   : > { %v1244_v57 = vmul.f32 %v3396_v56, %v3396_v56 }
 0x39a   : > { %1265 = vadd.xlane.f32.xlu0 %v1239_v41  ;;  %1263 = vadd.xlane.f32.xlu2 %v1238_v42 }
 0x39b   : > { %1267 = vadd.xlane.f32.xlu1 %v1240_v45  ;;  %v1655_v45 = vld [vmem:[#allocation20 + $0x58] sm:$0xff] (%p1604_p7) }
 0x3a2   : > { %1271 = vadd.xlane.f32.xlu0 %v1242_v48  ;;  %1269 = vadd.xlane.f32.xlu2 %v1241_v50 }
 0x3a3   : > { %1273 = vadd.xlane.f32.xlu1 %v1243_v51 }
 0x3aa   : > { %1275 = vadd.xlane.f32.xlu2 %v1244_v57 }
 0x3f5   : > { %v1246_v19 = vpop.xlane.xlu2 %1245  ;;  %v1248_v58 = vpop.xlane.xlu0 %1247 }
 0x3f6   : > { %v1250_v59 = vpop.xlane.xlu1 %1249  ;;  %v1277_v61 = vmul.f32 %v1246_v19, %v3283_v37  ;;  %v1278_v62 = vmul.f32 %v1248_v58, %v3283_v37 }
 0x3f7   : > { %v1279_v0 = vmul.f32 %v1250_v59, %v3283_v37 }
 0x3f8   : > { %v1293_v55 = vadd.f32 1e-05, %v1277_v61  ;;  %v3404_v4 = vadd.f32 1e-05, %v1278_v62 }
 0x3f9   : > { %v3406_v38 = vadd.f32 1e-05, %v1279_v0 }
 0x3fa   : > { %2397 = vrsqrt.f32 %v1293_v55  ;;  %vm1315_vm5 = vweird.f32 %v1293_v55  ;;  %vm1325_vm6 = vweird.f32 %v3404_v4 }
 0x3fb   : > { %2399 = vrsqrt.f32 %v3406_v38  ;;  %vm1335_vm7 = vweird.f32 %v3406_v38 }
 0x3fc   : > { %2401 = vrsqrt.f32 %v3404_v4 }
 0x3fd   : > { %v1252_v6 = vpop.xlane.xlu2 %1251  ;;  %v1254_v7 = vpop.xlane.xlu0 %1253 }
 0x3fe   : > { %v1280_v10 = vmul.f32 %v1252_v6, %v3283_v37  ;;  %v1256_v12 = vpop.xlane.xlu1 %1255  ;;  %v1281_v13 = vmul.f32 %v1254_v7, %v3283_v37 }
 0x3ff   : > { %v1282_v16 = vmul.f32 %v1256_v12, %v3283_v37 }
 0x400   : > { %v2398_v18 = vpop.eup %2397  ;;  %v3417_v20 = vadd.f32 1e-05, %v1280_v10  ;;  %v3419_v21 = vadd.f32 1e-05, %v1281_v13 }
 0x401   : > { %v2400_v22 = vpop.eup %2399  ;;  %v1310_v2 = vmul.f32 %v2398_v18, %v1293_v55  ;;  %v3421_v24 = vadd.f32 1e-05, %v1282_v16  ;;  %vm1316_vm8 = vweird.f32 %v2398_v18 }
 0x402   : > { %v2402_v25 = vpop.eup %2401  ;;  %v1330_v28 = vmul.f32 %v2400_v22, %v3406_v38  ;;  %2403 = vrsqrt.f32 %v3417_v20  ;;  %vm1336_vm9 = vweird.f32 %v2400_v22  ;;  %vm1345_vm11 = vweird.f32 %v3417_v20  ;;  %vm1317_vm15 = vmor %vm1315_vm5, %vm1316_vm8 }
 0x403   : > { %v1311_v30 = vmul.f32 %v2398_v18, %v1310_v2  ;;  %v1320_v31 = vmul.f32 %v2402_v25, %v3404_v4  ;;  %2405 = vrsqrt.f32 %v3421_v24  ;;  %vm1326_vm10 = vweird.f32 %v2402_v25  ;;  %vm1337_vm1 = vmor %vm1335_vm7, %vm1336_vm9 }
 0x404   : > { %v1331_v32 = vmul.f32 %v2400_v22, %v1330_v28  ;;  %2407 = vrsqrt.f32 %v3419_v21  ;;  %vm1365_vm13 = vweird.f32 %v3421_v24  ;;  %vm1355_vm14 = vweird.f32 %v3419_v21  ;;  %vm1327_vm2 = vmor %vm1325_vm6, %vm1326_vm10 }
 0x405   : > { %v1312_v49 = vmul.f32 0.5, %v1311_v30  ;;  %v1321_v33 = vmul.f32 %v2402_v25, %v1320_v31  ;;  %v1258_v8 = vpop.xlane.xlu2 %1257  ;;  %v1260_v9 = vpop.xlane.xlu0 %1259 }
 0x406   : > { %v1332_v11 = vmul.f32 0.5, %v1331_v32  ;;  %v1283_v39 = vmul.f32 %v1258_v8, %v3283_v37  ;;  %v1262_v40 = vpop.xlane.xlu1 %1261  ;;  %v1284_v41 = vmul.f32 %v1260_v9, %v3283_v37 }
 0x407   : > { %v1313_v42 = vsub.f32 1.5, %v1312_v49  ;;  %v1322_v43 = vmul.f32 0.5, %v1321_v33  ;;  %v1285_v48 = vmul.f32 %v1262_v40, %v3283_v37 }
 0x408   : > { %v3440_v44 = vpop.eup %2403  ;;  %v1333_v14 = vsub.f32 1.5, %v1332_v11  ;;  %v3447_v17 = vadd.f32 1e-05, %v1283_v39  ;;  %v3455_v58 = vadd.f32 1e-05, %v1284_v41 }
 0x409   : > { %v3450_v50 = vpop.eup %2405  ;;  %v1314_v51 = vmul.f32 %v2398_v18, %v1313_v42  ;;  %v1323_v57 = vsub.f32 1.5, %v1322_v43  ;;  %v1340_v19 = vmul.f32 %v3440_v44, %v3417_v20  ;;  %vm1346_vm0 = vweird.f32 %v3440_v44 }
 0x40a   : > { %v3457_v59 = vpop.eup %2407  ;;  %v1334_v61 = vmul.f32 %v2400_v22, %v1333_v14  ;;  %v1360_v62 = vmul.f32 %v3450_v50, %v3421_v24  ;;  %2409 = vrsqrt.f32 %v3447_v17  ;;  %vm1366_vm3 = vweird.f32 %v3450_v50  ;;  %vm3493_vm5 = vmor %vm1345_vm11, %vm1346_vm0 }
 0x40b   : > { %v1318_v0 = vsel %vm1317_vm15, %v2398_v18, %v1314_v51  ;;  %v1324_v6 = vmul.f32 %v2402_v25, %v1323_v57  ;;  %v1341_v7 = vmul.f32 %v3440_v44, %v1340_v19  ;;  %v1350_v10 = vmul.f32 %v3457_v59, %v3419_v21  ;;  %vm3504_vm6 = vmor %vm1365_vm13, %vm1366_vm3 }
 0x40c   : > { %v1338_v55 = vsel %vm1337_vm1, %v2400_v22, %v1334_v61  ;;  %v1469_v12 = vmul.f32 %v1318_v0, %v3301_v53  ;;  %v1361_v13 = vmul.f32 %v3450_v50, %v1360_v62  ;;  %vm1356_vm4 = vweird.f32 %v3457_v59 }
 0x40d   : > { %v1471_v38 = vmul.f32 %v1338_v55, %v3304_v54  ;;  %v1328_v16 = vsel %vm1327_vm2, %v2402_v25, %v1324_v6  ;;  %v1342_v18 = vmul.f32 0.5, %v1341_v7  ;;  %v1351_v2 = vmul.f32 %v3457_v59, %v1350_v10  ;;  %vm3516_vm8 = vmor %vm1355_vm14, %vm1356_vm4  ;;  %v1264_v42 = vpop.xlane.xlu2 %1263 }
 0x40e   : > { %v1486_v28 = vmul.f32 %v3424_v26, %v1469_v12  ;;  %v1470_v22 = vmul.f32 %v1328_v16, %v3298_v52  ;;  %v1362_v29 = vmul.f32 0.5, %v1361_v13  ;;  %v3483_v31 = vadd.f32 1e-05, %v1285_v48  ;;  %v1268_v19 = vpop.xlane.xlu1 %1267  ;;  %v1266_v16 = vpop.xlane.xlu0 %1265 }
 0x40f   : > { %v1488_v53 = vmul.f32 %v3424_v26, %v1471_v38  ;;  %v1343_v4 = vsub.f32 1.5, %v1342_v18  ;;  %v1352_v30 = vmul.f32 0.5, %v1351_v2  ;;  %2411 = vrsqrt.f32 %v3455_v58 }
 0x410   : > { %v3485_v32 = vpop.eup %2409  ;;  %v1503_v54 = vadd.f32 %v3427_v27, %v1486_v28  ;;  %v1487_v25 = vmul.f32 %v3424_v26, %v1470_v22  ;;  %v1363_v49 = vsub.f32 1.5, %v1362_v29  ;;  %2413 = vrsqrt.f32 %v3483_v31 }
 0x411   : > { %v1505_v33 = vadd.f32 %v3427_v27, %v1488_v53  ;;  %v1344_v8 = vmul.f32 %v3440_v44, %v1343_v4  ;;  %v1353_v20 = vsub.f32 1.5, %v1352_v30  ;;  %v1370_v11 = vmul.f32 %v3485_v32, %v3447_v17 }
 0x412   : > { %vm1519_vm7 = vcmp.lt.f32.partialorder %v1503_v54, 0.0  ;;  %v1554_v39 = vmul.f32 0.01, %v1503_v54  ;;  %v1504_v40 = vadd.f32 %v3427_v27, %v1487_v25  ;;  %v1364_v41 = vmul.f32 %v3450_v50, %v1363_v49 }
 0x413   : > { %vm1521_vm9 = vcmp.lt.f32.partialorder %v1505_v33, 0.0  ;;  %v1556_v43 = vmul.f32 0.01, %v1505_v33  ;;  %vm1538_vm10 = vmand %vm3442_vm12, %vm1519_vm7  ;;  %v1348_v14 = vsel %vm3493_vm5, %v3440_v44, %v1344_v8  ;;  %v1354_v48 = vmul.f32 %v3457_v59, %v1353_v20 }
 0x414   : > { %vm1540_vm11 = vmand %vm3442_vm12, %vm1521_vm9  ;;  %v1570_v21 = vsel %vm1538_vm10, %v1554_v39, %v1503_v54  ;;  %vm1520_vm13 = vcmp.lt.f32.partialorder %v1504_v40, 0.0  ;;  %v1555_v51 = vmul.f32 0.01, %v1504_v40  ;;  %v1472_v57 = vmul.f32 %v1348_v14, %v3321_v1 }
 0x415   : > { %v1572_v61 = vsel %vm1540_vm11, %v1556_v43, %v1505_v33  ;;  %1588 = vst [vmem:[%s3531_s24] sm:$0xff] %v1570_v21  ;;  %vm1539_vm14 = vmand %vm3442_vm12, %vm1520_vm13  ;;  %v1368_v44 = vsel %vm3504_vm6, %v3450_v50, %v1364_v41  ;;  %v1358_v1 = vsel %vm3516_vm8, %v3457_v59, %v1354_v48  ;;  %v1371_v62 = vmul.f32 %v3485_v32, %v1370_v11  ;;  %v3543_v0 = vpop.eup %2411  ;;  %v1270_v25 = vpop.xlane.xlu2 %1269 }
 0x416   : > { %1590 = vst [vmem:[%s3531_s24 + $0x10] sm:$0xff] %v1572_v61  ;;  %v1571_v6 = vsel %vm1539_vm14, %v1555_v51, %v1504_v40  ;;  %v1489_v7 = vmul.f32 %v3424_v26, %v1472_v57  ;;  %v1474_v10 = vmul.f32 %v1368_v44, %v3325_v63  ;;  %v1473_v55 = vmul.f32 %v1358_v1, %v3318_v60  ;;  %v2414_v52 = vpop.eup %2413  ;;  %v1274_v11 = vpop.xlane.xlu1 %1273 }
 0x417   : > { %1589 = vst [vmem:[%s3531_s24 + $0x8] sm:$0xff] %v1571_v6  ;;  %v1372_v12 = vmul.f32 0.5, %v1371_v62  ;;  %v1380_v38 = vmul.f32 %v3543_v0, %v3455_v58  ;;  %vm1375_vm15 = vweird.f32 %v3447_v17  ;;  %vm1376_vm0 = vweird.f32 %v3485_v32 }
 0x418   : > { %v1506_v50 = vadd.f32 %v3427_v27, %v1489_v7  ;;  %v1491_v59 = vmul.f32 %v3424_v26, %v1474_v10  ;;  %v1490_v13 = vmul.f32 %v3424_v26, %v1473_v55  ;;  %v1286_v60 = vmul.f32 %v1264_v42, %v3283_v37  ;;  %vm1377_vm5 = vmor %vm1375_vm15, %vm1376_vm0 }
 0x419   : > { %v1373_v18 = vsub.f32 1.5, %v1372_v12  ;;  %v1381_v29 = vmul.f32 %v3543_v0, %v1380_v38  ;;  %v1288_v4 = vmul.f32 %v1268_v19, %v3283_v37  ;;  %v1390_v20 = vmul.f32 %v2414_v52, %v3483_v31  ;;  %v1272_v19 = vpop.xlane.xlu0 %1271 }
 0x41a   : > { %vm1522_vm1 = vcmp.lt.f32.partialorder %v1506_v50, 0.0  ;;  %v1557_v63 = vmul.f32 0.01, %v1506_v50  ;;  %v1508_v2 = vadd.f32 %v3427_v27, %v1491_v59  ;;  %v1507_v28 = vadd.f32 %v3427_v27, %v1490_v13 }
 0x41b   : > { %vm1541_vm2 = vmand %vm3442_vm12, %vm1522_vm1  ;;  %v1374_v22 = vmul.f32 %v3485_v32, %v1373_v18  ;;  %v3565_v53 = vadd.f32 1e-05, %v1286_v60  ;;  %v1382_v8 = vmul.f32 0.5, %v1381_v29  ;;  %vm1386_vm8 = vweird.f32 %v3543_v0 }
 0x41c   : > { %v1573_v30 = vsel %vm1541_vm2, %v1557_v63, %v1506_v50  ;;  %vm1524_vm3 = vcmp.lt.f32.partialorder %v1508_v2, 0.0  ;;  %v1559_v54 = vmul.f32 0.01, %v1508_v2  ;;  %vm1523_vm4 = vcmp.lt.f32.partialorder %v1507_v28, 0.0 }
 0x41d   : > { %1591 = vst [vmem:[%s3531_s24 + $0x18] sm:$0xff] %v1573_v30  ;;  %vm1543_vm6 = vmand %vm3442_vm12, %vm1524_vm3  ;;  %v1558_v49 = vmul.f32 0.01, %v1507_v28  ;;  %v1378_v33 = vsel %vm1377_vm5, %v3485_v32, %v1374_v22  ;;  %2415 = vrsqrt.f32 %v3565_v53  ;;  %v1383_v40 = vsub.f32 1.5, %v1382_v8  ;;  %v1276_v50 = vpop.xlane.xlu2 %1275 }
 0x41e   : > { %v1575_v9 = vsel %vm1543_vm6, %v1559_v54, %v1508_v2  ;;  %vm1542_vm7 = vmand %vm3442_vm12, %vm1523_vm4  ;;  %v1475_v17 = vmul.f32 %v1378_v33, %v3342_v23  ;;  %v3583_v41 = vadd.f32 1e-05, %v1288_v4  ;;  %v1391_v24 = vmul.f32 %v2414_v52, %v1390_v20 }
 0x41f   : > { %1593 = vst [vmem:[%s3531_s24 + $0x28] sm:$0xff] %v1575_v9  ;;  %v1574_v39 = vsel %vm1542_vm7, %v1558_v49, %v1507_v28  ;;  %v1287_v42 = vmul.f32 %v1266_v16, %v3283_v37  ;;  %v1289_v43 = vmul.f32 %v1270_v25, %v3283_v37  ;;  %v1384_v23 = vmul.f32 %v3543_v0, %v1383_v40 }
 0x420   : > { %1592 = vst [vmem:[%s3531_s24 + $0x20] sm:$0xff] %v1574_v39  ;;  %v1492_v32 = vmul.f32 %v3424_v26, %v1475_v17  ;;  %vm1385_vm9 = vweird.f32 %v3455_v58  ;;  %2417 = vrsqrt.f32 %v3583_v41  ;;  %v1291_v14 = vmul.f32 %v1274_v11, %v3283_v37 }
 0x421   : > { %v1392_v21 = vmul.f32 0.5, %v1391_v24  ;;  %vm1387_vm10 = vmor %vm1385_vm9, %vm1386_vm8  ;;  %v3594_v51 = vadd.f32 1e-05, %v1287_v42  ;;  %v3596_v57 = vadd.f32 1e-05, %v1289_v43  ;;  %vm1396_vm11 = vweird.f32 %v2414_v52 }
 0x422   : > { %v1509_v48 = vadd.f32 %v3427_v27, %v1492_v32  ;;  %v1388_v44 = vsel %vm1387_vm10, %v3543_v0, %v1384_v23  ;;  %v3601_v1 = vadd.f32 1e-05, %v1291_v14  ;;  %vm1395_vm15 = vweird.f32 %v3483_v31 }
 0x423   : > { %v3598_v61 = vpop.eup %2415  ;;  %v1393_v62 = vsub.f32 1.5, %v1392_v21  ;;  %v1476_v6 = vmul.f32 %v1388_v44, %v3339_v3  ;;  %2419 = vrsqrt.f32 %v3594_v51  ;;  %v1290_v0 = vmul.f32 %v1272_v19, %v3283_v37  ;;  %vm1397_vm0 = vmor %vm1395_vm15, %vm1396_vm11 }
 0x424   : > { %vm1525_vm13 = vcmp.lt.f32.partialorder %v1509_v48, 0.0  ;;  %v1560_v58 = vmul.f32 0.01, %v1509_v48  ;;  %v1400_v7 = vmul.f32 %v3598_v61, %v3565_v53  ;;  %2421 = vrsqrt.f32 %v3596_v57 }
 0x425   : > { %vm1544_vm14 = vmand %vm3442_vm12, %vm1525_vm13  ;;  %v1394_v55 = vmul.f32 %v2414_v52, %v1393_v62  ;;  %v1493_v12 = vmul.f32 %v3424_v26, %v1476_v6  ;;  %vm1405_vm1 = vweird.f32 %v3565_v53  ;;  %2423 = vrsqrt.f32 %v3601_v1 }
 0x426   : > { %v1576_v10 = vsel %vm1544_vm14, %v1560_v58, %v1509_v48  ;;  %v2418_v3 = vpop.eup %2417  ;;  %v1401_v31 = vmul.f32 %v3598_v61, %v1400_v7  ;;  %vm1425_vm2 = vweird.f32 %v3583_v41  ;;  %v3622_v60 = vadd.f32 1e-05, %v1290_v0 }
 0x427   : > { %1594 = vst [vmem:[%s3531_s24 + $0x30] sm:$0xff] %v1576_v10  ;;  %v1398_v59 = vsel %vm1397_vm0, %v2414_v52, %v1394_v55  ;;  %v1510_v13 = vadd.f32 %v3427_v27, %v1493_v12  ;;  %v1420_v38 = vmul.f32 %v2418_v3, %v3583_v41  ;;  %v1292_v63 = vmul.f32 %v1276_v50, %v3283_v37 }
 0x428   : > { %v1477_v16 = vmul.f32 %v1398_v59, %v3346_v5  ;;  %v1402_v18 = vmul.f32 0.5, %v1401_v31  ;;  %vm1406_vm4 = vweird.f32 %v3598_v61  ;;  %vm1415_vm6 = vweird.f32 %v3594_v51 }
 0x429   : > { %vm1526_vm3 = vcmp.lt.f32.partialorder %v1510_v13, 0.0  ;;  %v1561_v2 = vmul.f32 0.01, %v1510_v13  ;;  %v1421_v28 = vmul.f32 %v2418_v3, %v1420_v38  ;;  %v3626_v22 = vpop.eup %2419  ;;  %2425 = vrsqrt.f32 %v3622_v60  ;;  %vm1407_vm8 = vmor %vm1405_vm1, %vm1406_vm4 }
 0x42a   : > { %v1494_v29 = vmul.f32 %v3424_v26, %v1477_v16  ;;  %vm1545_vm5 = vmand %vm3442_vm12, %vm1526_vm3  ;;  %v1403_v4 = vsub.f32 1.5, %v1402_v18  ;;  %v3633_v5 = vpop.eup %2421  ;;  %vm1426_vm7 = vweird.f32 %v2418_v3  ;;  %v1410_v54 = vmul.f32 %v3626_v22, %v3594_v51 }
 0x42b   : > { %v1577_v37 = vsel %vm1545_vm5, %v1561_v2, %v1510_v13  ;;  %v1422_v30 = vmul.f32 0.5, %v1421_v28  ;;  %v3637_v25 = vpop.eup %2423  ;;  %v1430_v33 = vmul.f32 %v3633_v5, %v3596_v57  ;;  %v3644_v8 = vadd.f32 1e-05, %v1292_v63  ;;  %vm1427_vm13 = vmor %vm1425_vm2, %vm1426_vm7 }
 0x42c   : > { %v1511_v52 = vadd.f32 %v3427_v27, %v1494_v29  ;;  %1595 = vst [vmem:[%s3531_s24 + $0x38] sm:$0xff] %v1577_v37  ;;  %v1404_v49 = vmul.f32 %v3598_v61, %v1403_v4  ;;  %v1411_v17 = vmul.f32 %v3626_v22, %v1410_v54  ;;  %vm1416_vm9 = vweird.f32 %v3626_v22 }
 0x42d   : > { %v1423_v9 = vsub.f32 1.5, %v1422_v30  ;;  %v1450_v20 = vmul.f32 %v3637_v25, %v3601_v1  ;;  %v1431_v40 = vmul.f32 %v3633_v5, %v1430_v33  ;;  %vm1436_vm14 = vweird.f32 %v3633_v5  ;;  %vm3679_vm0 = vmor %vm1415_vm6, %vm1416_vm9 }
 0x42e   : > { %vm1527_vm10 = vcmp.lt.f32.partialorder %v1511_v52, 0.0  ;;  %v1562_v11 = vmul.f32 0.01, %v1511_v52  ;;  %v1408_v39 = vsel %vm1407_vm8, %v3598_v61, %v1404_v49  ;;  %v1412_v24 = vmul.f32 0.5, %v1411_v17 }
 0x42f   : > { %vm1546_vm11 = vmand %vm3442_vm12, %vm1527_vm10  ;;  %v1478_v53 = vmul.f32 %v1408_v39, %v3363_v35  ;;  %v1424_v32 = vmul.f32 %v2418_v3, %v1423_v9  ;;  %v1451_v42 = vmul.f32 %v3637_v25, %v1450_v20  ;;  %v3660_v43 = vpop.eup %2425  ;;  %v1432_v14 = vmul.f32 0.5, %v1431_v40 }
 0x430   : > { %v1578_v23 = vsel %vm1546_vm11, %v1562_v11, %v1511_v52  ;;  %2427 = vrsqrt.f32 %v3644_v8  ;;  %v1413_v21 = vsub.f32 1.5, %v1412_v24  ;;  %vm1456_vm15 = vweird.f32 %v3637_v25 }
 0x431   : > { %1596 = vst [vmem:[%s3531_s24 + $0x40] sm:$0xff] %v1578_v23  ;;  %v1495_v48 = vmul.f32 %v3424_v26, %v1478_v53  ;;  %v1428_v35 = vsel %vm1427_vm13, %v2418_v3, %v1424_v32  ;;  %v1452_v19 = vmul.f32 0.5, %v1451_v42  ;;  %v1433_v44 = vsub.f32 1.5, %v1432_v14  ;;  %v1658_v14 = vld [vmem:[#allocation20 + $0x70] sm:$0xff] (%p1604_p7) }
 0x432   : > { %v1480_v61 = vmul.f32 %v1428_v35, %v3367_v36  ;;  %v1440_v41 = vmul.f32 %v3660_v43, %v3622_v60  ;;  %v1414_v62 = vmul.f32 %v3626_v22, %v1413_v21  ;;  %vm1435_vm1 = vweird.f32 %v3596_v57  ;;  %v1654_v35 = vld [vmem:[#allocation20 + $0x50] sm:$0xff] (%p1604_p7) }
 0x433   : > { %v1512_v58 = vadd.f32 %v3427_v27, %v1495_v48  ;;  %v1453_v36 = vsub.f32 1.5, %v1452_v19  ;;  %v1434_v0 = vmul.f32 %v3633_v5, %v1433_v44  ;;  %vm1437_vm2 = vmor %vm1435_vm1, %vm1436_vm14  ;;  %vm1455_vm3 = vweird.f32 %v3601_v1 }
 0x434   : > { %v1497_v7 = vmul.f32 %v3424_v26, %v1480_v61  ;;  %v1441_v10 = vmul.f32 %v3660_v43, %v1440_v41  ;;  %v1418_v55 = vsel %vm3679_vm0, %v3626_v22, %v1414_v62  ;;  %vm1457_vm5 = vmor %vm1455_vm3, %vm1456_vm15  ;;  %vm1446_vm9 = vweird.f32 %v3660_v43  ;;  %v1653_v61 = vld [vmem:[#allocation20 + $0x48] sm:$0xff] (%p1604_p7) }
 0x435   : > { %vm1528_vm4 = vcmp.lt.f32.partialorder %v1512_v58, 0.0  ;;  %v1563_v51 = vmul.f32 0.01, %v1512_v58  ;;  %v1454_v57 = vmul.f32 %v3637_v25, %v1453_v36  ;;  %v1479_v50 = vmul.f32 %v1418_v55, %v3360_v34  ;;  %v1651_v36 = vld [vmem:[#allocation20 + $0x38] sm:$0xff] (%p1604_p7) }
 0x436   : > { %v2428_v12 = vpop.eup %2427  ;;  %vm1547_vm6 = vmand %vm3442_vm12, %vm1528_vm4  ;;  %v1514_v1 = vadd.f32 %v3427_v27, %v1497_v7  ;;  %v1438_v3 = vsel %vm1437_vm2, %v3633_v5, %v1434_v0  ;;  %v1442_v31 = vmul.f32 0.5, %v1441_v10  ;;  %vm1445_vm10 = vweird.f32 %v3622_v60  ;;  %v1650_v0 = vld [vmem:[#allocation20 + $0x30] sm:$0xff] (%p1604_p7)  ;;  %v1649_v10 = vld [vmem:[#allocation20 + $0x28] sm:$0xff] (%p1604_p7) }
 0x437   : > { %v1579_v59 = vsel %vm1547_vm6, %v1563_v51, %v1512_v58  ;;  %v1481_v13 = vmul.f32 %v1438_v3, %v3383_v46  ;;  %v1458_v38 = vsel %vm1457_vm5, %v3637_v25, %v1454_v57  ;;  %v1460_v16 = vmul.f32 %v2428_v12, %v3644_v8  ;;  %vm1447_vm13 = vmor %vm1445_vm10, %vm1446_vm9  ;;  %v1652_v58 = vld [vmem:[#allocation20 + $0x40] sm:$0xff] (%p1604_p7)  ;;  %v1647_v55 = vld [vmem:[#allocation20 + $0x18] sm:$0xff] (%p1604_p7) }
 0x438   : > { %1597 = vst [vmem:[%s3531_s24 + $0x48] sm:$0xff] %v1579_v59  ;;  %vm1530_vm7 = vcmp.lt.f32.partialorder %v1514_v1, 0.0  ;;  %v1565_v18 = vmul.f32 0.01, %v1514_v1  ;;  %v1496_v63 = vmul.f32 %v3424_v26, %v1479_v50  ;;  %v1483_v2 = vmul.f32 %v1458_v38, %v3386_v47  ;;  %v1648_v51 = vld [vmem:[#allocation20 + $0x20] sm:$0xff] (%p1604_p7)  ;;  %v1646_v57 = vld [vmem:[#allocation20 + $0x10] sm:$0xff] (%p1604_p7) }
 0x439   : > { %vm1549_vm8 = vmand %vm3442_vm12, %vm1530_vm7  ;;  %v1498_v34 = vmul.f32 %v3424_v26, %v1481_v13  ;;  %v1443_v28 = vsub.f32 1.5, %v1442_v31  ;;  %v1461_v46 = vmul.f32 %v2428_v12, %v1460_v16  ;;  %vm1466_vm14 = vweird.f32 %v2428_v12  ;;  %v2429_v59 = vld [vmem:[#allocation21] ss:$0 sm:$0xff] (%p1604_p7) }
 0x43a   : > { %v1581_v22 = vsel %vm1549_vm8, %v1565_v18, %v1514_v1  ;;  %v1513_v29 = vadd.f32 %v3427_v27, %v1496_v63  ;;  %v1500_v4 = vmul.f32 %v3424_v26, %v1483_v2  ;;  %vm1465_vm4 = vweird.f32 %v3644_v8  ;;  %v1644_v1 = vld [vmem:[#allocation20] sm:$0xff] (%p1604_p7) }
 0x43b   : > { %1599 = vst [vmem:[%s3531_s24 + $0x58] sm:$0xff] %v1581_v22  ;;  %v1515_v5 = vadd.f32 %v3427_v27, %v1498_v34  ;;  %v1444_v37 = vmul.f32 %v3660_v43, %v1443_v28  ;;  %v1462_v47 = vmul.f32 0.5, %v1461_v46  ;;  %vm1467_vm5 = vmor %vm1465_vm4, %vm1466_vm14  ;;  %v1684_v3 = vlaneseq (%p1604_p7)  ;;  %v1700_v18 = vld [vmem:[%s3868_s10] sm:$0xff] (%p1604_p7) }
 0x43c   : > { %vm1529_vm11 = vcmp.lt.f32.partialorder %v1513_v29, 0.0  ;;  %v1564_v30 = vmul.f32 0.01, %v1513_v29  ;;  %v1517_v54 = vadd.f32 %v3427_v27, %v1500_v4 }
 0x43d   : > { %vm1548_vm15 = vmand %vm3442_vm12, %vm1529_vm11  ;;  %vm1531_vm0 = vcmp.lt.f32.partialorder %v1515_v5, 0.0  ;;  %v1566_v25 = vmul.f32 0.01, %v1515_v5  ;;  %v1448_v52 = vsel %vm1447_vm13, %v3660_v43, %v1444_v37  ;;  %v1463_v49 = vsub.f32 1.5, %v1462_v47 }
 0x43e   : > { %v1580_v33 = vsel %vm1548_vm15, %v1564_v30, %v1513_v29  ;;  %vm1550_vm1 = vmand %vm3442_vm12, %vm1531_vm0  ;;  %vm1533_vm2 = vcmp.lt.f32.partialorder %v1517_v54, 0.0  ;;  %v1568_v60 = vmul.f32 0.01, %v1517_v54  ;;  %v1482_v9 = vmul.f32 %v1448_v52, %v3380_v15 }
 0x43f   : > { %1598 = vst [vmem:[%s3531_s24 + $0x50] sm:$0xff] %v1580_v33  ;;  %v1582_v17 = vsel %vm1550_vm1, %v1566_v25, %v1515_v5  ;;  %vm1552_vm3 = vmand %vm3442_vm12, %vm1533_vm2  ;;  %v1464_v20 = vmul.f32 %v2428_v12, %v1463_v49  ;;  %v1685_v31 = vand.u32 (%p1604_p7), 127, %v1684_v3 }
 0x440   : > { %1600 = vst [vmem:[%s3531_s24 + $0x60] sm:$0xff] %v1582_v17  ;;  %v1584_v11 = vsel %vm1552_vm3, %v1568_v60, %v1517_v54  ;;  %v1499_v39 = vmul.f32 %v3424_v26, %v1482_v9 }
 0x441   : > { %1602 = vst [vmem:[%s3531_s24 + $0x70] sm:$0xff] %v1584_v11  ;;  %v1468_v40 = vsel %vm1467_vm5, %v2428_v12, %v1464_v20  ;;  %v1645_v12 = vld [vmem:[#allocation20 + $0x8] sm:$0xff] (%p1604_p7) }
 0x442   : > { %v1516_v15 = vadd.f32 %v3427_v27, %v1499_v39  ;;  %v1484_v53 = vmul.f32 %v1468_v40, %v3396_v56  ;;  %v1659_v56 = vld [vmem:[#allocation20 + $0x78] sm:$0xff] (%p1604_p7) }
 0x443   : > { %1664 = vmatpush.msra.mxu0 (%p1604_p7), %v1659_v56 }
 0x444   : > { %vm1532_vm6 = vcmp.lt.f32.partialorder %v1516_v15, 0.0  ;;  %v1567_v32 = vmul.f32 0.01, %v1516_v15  ;;  %v1501_v24 = vmul.f32 %v3424_v26, %v1484_v53  ;;  %v1657_v26 = vld [vmem:[#allocation20 + $0x68] sm:$0xff] (%p1604_p7) }
 0x445   : > { %vm1551_vm7 = vmand %vm3442_vm12, %vm1532_vm6  ;;  %1665 = vmatpush.msra.mxu0 (%p1604_p7), %v1658_v14 }
 0x446   : > { %v1583_v8 = vsel %vm1551_vm7, %v1567_v32, %v1516_v15  ;;  %v1518_v42 = vadd.f32 %v3427_v27, %v1501_v24  ;;  %v1656_v27 = vld [vmem:[#allocation20 + $0x60] sm:$0xff] (%p1604_p7) }
 0x447   : > { %1601 = vst [vmem:[%s3531_s24 + $0x68] sm:$0xff] %v1583_v8  ;;  %1610 = sbr.rel (!%p1604_p7) target bundleno = 1520 (0x5f0), region = 96  ;;  %1666 = vmatpush.msra.mxu0 (%p1604_p7), %v1657_v26 }
 0x448   : > { %vm1534_vm8 = vcmp.lt.f32.partialorder %v1518_v42, 0.0  ;;  %v1569_v43 = vmul.f32 0.01, %v1518_v42 }
 0x449   : > { %vm1553_vm9 = vmand %vm3442_vm12, %vm1534_vm8  ;;  %1667 = vmatpush.msra.mxu0 (%p1604_p7), %v1656_v27  ;;  %vm1686_vm12 = vcmp.lt.s32.totalorder (%p1604_p7), %v1685_v31, 8 }
 0x44a   : > { %v1585_v23 = vsel %vm1553_vm9, %v1569_v43, %v1518_v42  ;;  %v1701_v63 = vsel (%p1604_p7), %vm1686_vm12, %v1700_v18, -1e+30 }
 0x44b   : > { %1603 = vst [vmem:[%s3531_s24 + $0x78] sm:$0xff] %v1585_v23  ;;  %1668 = vmatpush.msra.mxu0 (%p1604_p7), %v1655_v45 }
 0x44d   : > { %1669 = vmatpush.msra.mxu0 %v1654_v35 }
 0x44f   : > { %1670 = vmatpush.msra.mxu0 %v1653_v61 }
 0x451   : > { %1671 = vmatpush.msra.mxu0 %v1652_v58 }
 0x452   : > { %v1613_v48 = vld [vmem:[%s1612_s2] sm:$0x1] }
 0x453   : > { %1614 = vst [vmem:[#allocation5] sm:$0x1] %v1613_v48  ;;  %v1617_v21 = vld [vmem:[%s1616_s20] sm:$0x1]  ;;  %1672 = vmatpush.msra.mxu0 %v1651_v36 }
 0x454   : > { %1618 = vst [vmem:[#allocation5 + $0x1] sm:$0x1] %v1617_v21  ;;  %v1621_v19 = vld [vmem:[%s1620_s17] sm:$0x1] }
 0x455   : > { %1622 = vst [vmem:[#allocation5 + $0x2] sm:$0x1] %v1621_v19  ;;  %v1625_v44 = vld [vmem:[%s1624_s9] sm:$0x1]  ;;  %1673 = vmatpush.msra.mxu0 %v1650_v0 }
 0x456   : > { %1626 = vst [vmem:[#allocation5 + $0x3] sm:$0x1] %v1625_v44  ;;  %v1629_v41 = vld [vmem:[%s1628_s13] sm:$0x1] }
 0x457   : > { %1630 = vst [vmem:[#allocation5 + $0x4] sm:$0x1] %v1629_v41  ;;  %v1633_v62 = vld [vmem:[%s1632_s18] sm:$0x1]  ;;  %1674 = vmatpush.msra.mxu0 %v1649_v10 }
 0x458   : > { %1634 = vst [vmem:[#allocation5 + $0x5] sm:$0x1] %v1633_v62  ;;  %v1637_v6 = vld [vmem:[%s1636_s29] sm:$0x1] }
 0x459   : > { %1638 = vst [vmem:[#allocation5 + $0x6] sm:$0x1] %v1637_v6  ;;  %v1641_v7 = vld [vmem:[%s1640_s16] sm:$0x1]  ;;  %1675 = vmatpush.msra.mxu0 %v1648_v51 }
 0x45a   : > { %1642 = vst [vmem:[#allocation5 + $0x7] sm:$0x1] %v1641_v7 }
 0x45b   : > { %1676 = vmatpush.msra.mxu0 %v1647_v55 }
 0x45d   : > { %1677 = vmatpush.msra.mxu0 %v1646_v57 }
 0x45f   : > { %1678 = vmatpush.msra.mxu0 %v1645_v12 }
 0x461   : > { %v1643_v50 = vld [vmem:[#allocation5] sm:$0xff]  ;;  %1679 = vmatpush.msra.mxu0 %v1644_v1 }
 0x462   : > { %1680 = vmatmul.f32.vlgmr.msra.gmra.mxu0 %v1643_v50 }
 0x4df   : > { %v1681_v13 = vpop.f32.mrf.mxu0 }
 0x4e0   : > { %v1682_v38 = vadd.f32 %v2429_v59, %v1681_v13 }
 0x4e2   : > { %v1687_v16 = vsel %vm1686_vm12, %v1682_v38, -1e+30 }
 0x4e3   : > { %1688 = vmax.xlane.f32.xlu0 %v1687_v16 }
 0x4eb   : > { %1702 = vmax.xlane.f32.xlu0 %v1701_v63 }
 0x556   : > { %v1689_v2 = vpop.xlane.xlu0 %1688 }
 0x557   : > { %v1690_v34 = vsub.f32 %v1687_v16, %v1689_v2 }
 0x559   : > { %v1691_v28 = vmul.f32 1.442695, %v1690_v34 }
 0x55b   : > { %2430 = vpow2.f32 %v1691_v28 }
 0x55e   : > { %v1703_v46 = vpop.xlane.xlu0 %1702 }
 0x55f   : > { %v1704_v22 = vsub.f32 %v1701_v63, %v1703_v46 }
 0x561   : > { %v2431_v29 = vpop.eup %2430  ;;  %v1705_v4 = vmul.f32 1.442695, %v1704_v22 }
 0x562   : > { %v1693_v5 = vsel %vm1686_vm12, %v2431_v29, 0.0 }
 0x563   : > { %2432 = vpow2.f32 %v1705_v4  ;;  %1694 = vadd.xlane.f32.xlu1 %v1693_v5 }
 0x569   : > { %v2433_v37 = vpop.eup %2432 }
 0x56a   : > { %v1707_v47 = vsel %vm1686_vm12, %v2433_v37, 0.0 }
 0x56b   : > { %1708 = vadd.xlane.f32.xlu1 %v1707_v47 }
 0x5d6   : > { %v1695_v30 = vpop.xlane.xlu1 %1694 }
 0x5d7   : > { %2434 = vlog2.f32 %v1695_v30 }
 0x5dd   : > { %v2435_v25 = vpop.eup %2434 }
 0x5de   : > { %v1709_v54 = vpop.xlane.xlu1 %1708  ;;  %v1697_v52 = vmul.f32 0.6931472, %v2435_v25 }
 0x5df   : > { %2436 = vlog2.f32 %v1709_v54 }
 0x5e0   : > { %v1698_v33 = vsub.f32 %v1690_v34, %v1697_v52 }
 0x5e2   : > { %v1699_v17 = vmul.f32 0.6, %v1698_v33 }
 0x5e5   : > { %v2437_v49 = vpop.eup %2436 }
 0x5e6   : > { %v1711_v60 = vmul.f32 0.6931472, %v2437_v49 }
 0x5e8   : > { %v1712_v9 = vsub.f32 %v1704_v22, %v1711_v60 }
 0x5ea   : > { %v1713_v20 = vmul.f32 0.4, %v1712_v9 }
 0x5ec   : > { %v1714_v11 = vadd.f32 %v1713_v20, %v1699_v17 }
 0x5ee   : > { %v1715_v39 = vsel %vm1686_vm12, %v1714_v11, 0.0 }
 0x5ef   : > { %1716 = vst [vmem:[#allocation23] sm:$0xff] %v1715_v39 }
 0x5f0 PF: > { %s3869_s5 = sld [smem:[#allocation39_spill]]  ;;  %s2821_s15 = smov [#allocation23]  }
 0x5f1   : > { %s3870_s24 = sld [smem:[#allocation51_spill]]  ;;  %s1723_s28 = sshll.u32 %s2821_s15, 4  ;;  %s1724_s28 = int_to_ptr.vmem [resolvable:$true] %s1723_s28 }
 0x5f6   : > { %p2307_p10 = scmp.eq.s32.totalorder %s3869_s5, 1 }
 0x5f7   : > { %s1725_s6 = sshll.u32 %s3870_s24, 4  ;;  %s1726_s6 = int_to_ptr.hbm [resolvable:$true] %s1725_s6 }
 0x5f8   : > { %2271 = dma.vmem_to_hbm [thread:$0]  (%p2307_p10), %s1724_s28, 128, %s1726_s6, [#allocation14]  }
 0x5f9   : > { %2769 = dma.done.wait (%p2307_p10), [#allocation14], 128  }
 0x5fa   : > { %2771 = vsyncadd (%p2307_p10), [#allocation14], 4294967168 }
 0x5fb PF: > { %s61_s26 = sadd.s32 1, %s2806_s26   ;;  %s3871_s30 = sld [smem:[#allocation45_spill]] }
 0x5fc   : > { %p58_p8 = scmp.ge.s32.totalorder %s61_s26, 4   ;;  %s3872_s19 = sld [smem:[#allocation44_spill]] }
 0x5fd   : > { %s3873_s11 = sld [smem:[#allocation41_spill]]  ;;  %s3874_s2 = smov %s2778_s3 }
 0x5fe   : > { %s3875_s3 = smov %s2782_s21  ;;  %s3877_s4 = smov %s2790_s22 }
 0x5ff   : > { %s3878_s22 = smov %s2794_s23  ;;  %s3880_s24 = smov %s2802_s25 }
 0x600   :  { %60 = sbr.rel (!%p58_p8) target bundleno = 28 (0x1c), region = 167 }
 0x601   : > { %s3876_s21 = smov %s3871_s30 }
 0x602   : > { %s3879_s23 = smov %s3872_s19 }
 0x603   : > { %s3881_s25 = smov %s3873_s11 }
 0x605   :  { %1739 = vsyncpa [#allocation13], 1 }
 0x606   :  { %1741 = vsyncpa [#allocation13 + $0x1], 1 }
 0x607   :  { %1742 = vsyncpa [#allocation16], 1 }
 0x608   :  { %1744 = vsyncpa [#allocation16 + $0x1], 1 }
 0x609   :  { %1745 = vsyncpa [#allocation19], 1 }
 0x60a   :  { %1747 = vsyncpa [#allocation19 + $0x1], 1 }
 0x60b   :  { %1748 = vsyncpa [#allocation22], 1 }
 0x60c   :  { %1749 = vsyncpa [#allocation14], 1 }
 0x60d   :  { %1751 = vsyncpa [#allocation14 + $0x1], 1 }

</bundles_post_ra>
